<compile_context>
chip_gen: v6e
topology: v6e:2x2x1
jax: 0.10.0
libtpu: 0.0.40
codegen_flags: <defaults>
</compile_context>

<pallas_src>
import math
from functools import partial

import jax
import jax.numpy as jnp
from jax import lax
from jax.experimental import pallas as pl
from jax.experimental.pallas import tpu as pltpu  # noqa: F401  (imported per spec)


_INV_SQRT2 = 0.7071067811865476


def _gelu_exact(x):
    # PyTorch nn.GELU() default is the exact (erf) formulation.
    return 0.5 * x * (1.0 + lax.erf(x * _INV_SQRT2))


# ----------------------------------------------------------------------------
# Kernel
# ----------------------------------------------------------------------------
def encoder_fused_kernel(x_ref, pos_ref,
                         wqkv_ref, bqkv_ref, wo_ref, bo_ref,
                         gamma_ref, beta_ref,
                         wlat_ref, blat_ref, o_ref,
                         *, batch, seq, num_heads, num_blocks):
    """Fused Encoder forward (pos-add + all attention blocks + to_latent).

    x_ref     : (N, D) f32        activations, N = B*S, rows ordered (b, s)
    pos_ref   : (N, D) f32        positional encoding, tiled over batch
    wqkv_ref  : (nb, D, 3D) bf16  in_proj.weight^T (cols [q|k|v]); softmax
                                  scale folded into the q columns
    bqkv_ref  : (nb, 1, 3D) f32   in_proj bias (scale folded into q part)
    wo_ref    : (nb, H, hd, D) bf16  per-head rows of out_proj.weight^T
    bo_ref    : (nb, 1, D) f32    out_proj bias
    gamma/beta: (nb, 1, D) f32    LayerNorm affine params
    wlat_ref  : (D, LPAD) bf16    to_latent weight^T, zero-padded to 128 lanes
    blat_ref  : (1, LPAD) f32     to_latent bias, zero-padded
    o_ref     : (N, LPAD) f32     lane-dense output
    """
    N, D = x_ref.shape
    B, S, H = batch, seq, num_heads
    hd = D // H
    G = H * B                                     # fused (head, batch) batch dim

    # Positional-encoding add fused into the kernel (no extra HBM round trip).
    x = x_ref[...] + pos_ref[...]                 # (N, D) f32

    def split_heads(qkv, off):
        # (N, 3D) --static lane slices--> (H, N, hd) --reshape--> (H*B, S, hd)
        # with g = h*B + b.  S == 8 keeps the split sublane-group aligned, so
        # the reshape is pure vreg relabeling (no data movement).
        per_head = jnp.stack(
            [qkv[:, off + h * hd: off + (h + 1) * hd] for h in range(H)], axis=0)
        return per_head.reshape(G, S, hd)

    for l in range(num_blocks):                   # static unroll; weights stay VMEM-resident
        wqkv = wqkv_ref[l]                        # (D, 3D)  bf16
        bqkv = bqkv_ref[l]                        # (1, 3D)  f32
        wo = wo_ref[l]                            # (H, hd, D) bf16
        bo = bo_ref[l]                            # (1, D)   f32
        gamma = gamma_ref[l]
        beta = beta_ref[l]

        # Fused Q/K/V projection: ONE MXU push (M=N, K=D, Nout=3D), bf16 operands,
        # f32 accumulation.  Softmax scale is already folded into the q columns.
        qkv = jnp.dot(x.astype(jnp.bfloat16), wqkv,
                      preferred_element_type=jnp.float32) + bqkv       # (N, 3D) f32

        q = split_heads(qkv, 0).astype(jnp.bfloat16)                   # (G, S, hd)
        k = split_heads(qkv, D).astype(jnp.bfloat16)
        v = split_heads(qkv, 2 * D).astype(jnp.bfloat16)

        # Attention batched over (head, batch): no cross-batch work, no mask.
        scores = lax.dot_general(q, k, (((2,), (2,)), ((0,), (0,))),
                                 preferred_element_type=jnp.float32)   # (G, S, S)
        m = jnp.max(scores, axis=-1, keepdims=True)
        p = jnp.exp(scores - m)
        p = p / jnp.sum(p, axis=-1, keepdims=True)                     # exact softmax
        ctx = lax.dot_general(p.astype(jnp.bfloat16), v,
                              (((2,), (1,)), ((0,), (0,))),
                              preferred_element_type=jnp.float32)      # (G, S, hd)

        # Output projection folded per head (no concat / transpose):
        #   attn = sum_h ctx_h @ (Wo^T)[h*hd:(h+1)*hd, :]
        ctx = ctx.reshape(H, N, hd).astype(jnp.bfloat16)               # tile-aligned merge
        attn = lax.dot_general(ctx, wo, (((2,), (1,)), ((0,), (0,))),
                               preferred_element_type=jnp.float32)     # (H, N, D)
        attn = jnp.sum(attn, axis=0) + bo                              # (N, D)

        # Residual + LayerNorm(eps=1e-5) + exact GELU (all f32).
        y = attn + x
        mean = jnp.mean(y, axis=-1, keepdims=True)
        var = jnp.mean((y - mean) ** 2, axis=-1, keepdims=True)
        y = (y - mean) * lax.rsqrt(var + 1e-5)
        y = y * gamma + beta
        x = _gelu_exact(y)

    # to_latent: single push, lane-dense padded-to-128 store.
    out = jnp.dot(x.astype(jnp.bfloat16), wlat_ref[...],
                  preferred_element_type=jnp.float32) + blat_ref[...]
    o_ref[...] = out.astype(o_ref.dtype)


# ----------------------------------------------------------------------------
# Parameter construction (PyTorch layout) and packing into kernel layout
# ----------------------------------------------------------------------------
def make_positional_encoding(embed_dim, seq_len):
    # Mirrors Encoder._generate_positional_encoding (requires even embed_dim).
    assert embed_dim % 2 == 0
    position = jnp.arange(seq_len, dtype=jnp.float32)[:, None]
    div_term = jnp.exp(jnp.arange(0, embed_dim, 2, dtype=jnp.float32)
                       * (-math.log(10000.0) / embed_dim))
    pe = jnp.zeros((seq_len, embed_dim), dtype=jnp.float32)
    pe = pe.at[:, 0::2].set(jnp.sin(position * div_term))
    pe = pe.at[:, 1::2].set(jnp.cos(position * div_term))
    return pe[None]                                          # (1, seq, embed)


def init_raw_params(key, config):
    """Deterministic synthetic parameters in PyTorch layouts."""
    D = config["input_dim"]
    L = config["latent_dim"]
    nb = config["attention_blocks"]
    keys = jax.random.split(key, 2 * nb + 1)
    blocks = []
    for i in range(nb):
        k1, k2 = keys[2 * i], keys[2 * i + 1]
        blocks.append(dict(
            in_proj_weight=0.02 * jax.random.normal(k1, (3 * D, D), jnp.float32),
            in_proj_bias=jnp.zeros((3 * D,), jnp.float32),
            out_proj_weight=0.02 * jax.random.normal(k2, (D, D), jnp.float32),
            out_proj_bias=jnp.zeros((D,), jnp.float32),
            ln_weight=jnp.ones((D,), jnp.float32),
            ln_bias=jnp.zeros((D,), jnp.float32),
        ))
    w_lat = 0.02 * jax.random.normal(keys[-1], (L, D), jnp.float32)  # (out, in)
    b_lat = jnp.zeros((L,), jnp.float32)
    return dict(blocks=blocks, w_lat=w_lat, b_lat=b_lat)


def pack_params(raw, config):
    """Pre-transpose / fuse / scale-fold / bf16-cast weights for the kernel."""
    D = config["input_dim"]
    L = config["latent_dim"]
    H = config["num_heads"]
    hd = D // H
    LPAD = max(128, ((L + 127) // 128) * 128)
    scale = 1.0 / math.sqrt(hd)

    wqkv, bqkv, wo, bo, gm, bt = ([] for _ in range(6))
    for blk in raw["blocks"]:
        Win, bin_ = blk["in_proj_weight"], blk["in_proj_bias"]        # (3D, D), (3D,)
        Wq, Wk, Wv = Win[:D], Win[D:2 * D], Win[2 * D:]
        bqv, bkv, bvv = bin_[:D], bin_[D:2 * D], bin_[2 * D:]
        # Fused in_proj^T with softmax scale folded into the q columns/bias.
        w_fused = jnp.concatenate([Wq.T * scale, Wk.T, Wv.T], axis=1)  # (D, 3D)
        b_fused = jnp.concatenate([bqv * scale, bkv, bvv])             # (3D,)
        wqkv.append(w_fused.astype(jnp.bfloat16))
        bqkv.append(b_fused.reshape(1, 3 * D))
        # out_proj: concat_h(ctx_h) @ Wo^T == sum_h ctx_h @ (Wo^T)[h*hd:(h+1)*hd]
        wo.append(blk["out_proj_weight"].T.reshape(H, hd, D).astype(jnp.bfloat16))
        bo.append(blk["out_proj_bias"].reshape(1, D))
        gm.append(blk["ln_weight"].reshape(1, D))
        bt.append(blk["ln_bias"].reshape(1, D))

    stack = lambda xs: jnp.stack(xs, axis=0)
    w_lat_pad = jnp.zeros((D, LPAD), jnp.float32).at[:, :L].set(raw["w_lat"].T)
    b_lat_pad = jnp.zeros((1, LPAD), jnp.float32).at[0, :L].set(raw["b_lat"])
    return dict(
        pos_enc=make_positional_encoding(D, D),        # (1, input_dim, input_dim)
        wqkv=stack(wqkv), bqkv=stack(bqkv), wo=stack(wo), bo=stack(bo),
        gamma=stack(gm), beta=stack(bt),
        w_lat_pad=w_lat_pad.astype(jnp.bfloat16), b_lat_pad=b_lat_pad,
    )


# ----------------------------------------------------------------------------
# Forward pass (semantics match Encoder.forward) — ONE pallas_call
# ----------------------------------------------------------------------------
def encoder_forward(x, params, config):
    D = config["input_dim"]
    L = config["latent_dim"]
    H = config["num_heads"]
    nb = config["attention_blocks"]
    hd = D // H

    if x.ndim == 2:
        x = x[:, None, :]                               # unsqueeze(1)
    B, S, Dx = x.shape
    assert Dx == D and D % H == 0
    assert S <= D, "positional encoding only covers seq_len <= input_dim"
    N = B * S
    LPAD = params["w_lat_pad"].shape[1]

    # Host-side layout plumbing (tiny, one-time per call).
    pos = params["pos_enc"][0, :S, :]                                    # (S, D)
    pos_f = jnp.broadcast_to(pos[None], (B, S, D)).reshape(N, D)
    x_f = x.reshape(N, D)

    full = lambda shape: pl.BlockSpec(shape, lambda: (0,) * len(shape))

    out = pl.pallas_call(
        partial(encoder_fused_kernel, batch=B, seq=S, num_heads=H, num_blocks=nb),
        out_shape=jax.ShapeDtypeStruct((N, LPAD), jnp.float32),
        in_specs=[
            full((N, D)), full((N, D)),
            full((nb, D, 3 * D)), full((nb, 1, 3 * D)),
            full((nb, H, hd, D)), full((nb, 1, D)),
            full((nb, 1, D)), full((nb, 1, D)),
            full((D, LPAD)), full((1, LPAD)),
        ],
        out_specs=full((N, LPAD)),
    )(x_f, pos_f,
      params["wqkv"], params["bqkv"], params["wo"], params["bo"],
      params["gamma"], params["beta"],
      params["w_lat_pad"], params["b_lat_pad"])

    latent = out[:, :L]
    # x.squeeze(1) before to_latent: only drops the sequence axis if S == 1
    if S == 1:
        return latent.reshape(B, L)
    return latent.reshape(B, S, L)


# ----------------------------------------------------------------------------
if __name__ == "__main__":
    config = dict(input_dim=32, latent_dim=16, num_heads=4, attention_blocks=2)
    B, S = 2, 8

    key = jax.random.PRNGKey(0)
    k_param, k_x = jax.random.split(key)
    raw = init_raw_params(k_param, config)
    params = pack_params(raw, config)
    x = jax.random.normal(k_x, (B, S, config["input_dim"]), jnp.float32)

    fwd = jax.jit(lambda xx, pp: encoder_forward(xx, pp, config))
    latent = fwd(x, params)
    jax.block_until_ready(latent)
    assert latent.shape == (B, S, config["latent_dim"])
    assert bool(jnp.all(jnp.isfinite(latent)))
    print("KERNEL_OK")
</pallas_src>

<mosaic_0001>
module attributes {stable_mosaic.version = 11 : i64} {
  func.func @encoder_fused_kernel(%arg0: memref<16x32xf32, #tpu.memory_space<vmem>>, %arg1: memref<16x32xf32, #tpu.memory_space<vmem>>, %arg2: memref<2x32x96xbf16, #tpu.memory_space<vmem>>, %arg3: memref<2x1x96xf32, #tpu.memory_space<vmem>>, %arg4: memref<2x4x8x32xbf16, #tpu.memory_space<vmem>>, %arg5: memref<2x1x32xf32, #tpu.memory_space<vmem>>, %arg6: memref<2x1x32xf32, #tpu.memory_space<vmem>>, %arg7: memref<2x1x32xf32, #tpu.memory_space<vmem>>, %arg8: memref<32x128xbf16, #tpu.memory_space<vmem>>, %arg9: memref<1x128xf32, #tpu.memory_space<vmem>>, %arg10: memref<16x128xf32, #tpu.memory_space<vmem>>) attributes {dimension_semantics = [], scalar_prefetch = 0 : i64, scratch_operands = 0 : i64, tpu.core_type = #tpu.core_type<tc>} {
    %c0 = arith.constant 0 : index
    %c0_0 = arith.constant 0 : index
    %0 = vector.load %arg0[%c0, %c0_0] : memref<16x32xf32, #tpu.memory_space<vmem>>, vector<16x32xf32>
    %c0_1 = arith.constant 0 : index
    %c0_2 = arith.constant 0 : index
    %1 = vector.load %arg1[%c0_1, %c0_2] : memref<16x32xf32, #tpu.memory_space<vmem>>, vector<16x32xf32>
    %2 = arith.addf %0, %1 : vector<16x32xf32>
    %c0_3 = arith.constant 0 : index
    %c0_4 = arith.constant 0 : index
    %c0_5 = arith.constant 0 : index
    %3 = vector.load %arg2[%c0_3, %c0_4, %c0_5] : memref<2x32x96xbf16, #tpu.memory_space<vmem>>, vector<1x32x96xbf16>
    %4 = vector.shape_cast %3 : vector<1x32x96xbf16> to vector<32x96xbf16>
    %c0_6 = arith.constant 0 : index
    %c0_7 = arith.constant 0 : index
    %c0_8 = arith.constant 0 : index
    %5 = vector.load %arg3[%c0_6, %c0_7, %c0_8] : memref<2x1x96xf32, #tpu.memory_space<vmem>>, vector<1x1x96xf32>
    %6 = vector.shape_cast %5 : vector<1x1x96xf32> to vector<1x96xf32>
    %c0_9 = arith.constant 0 : index
    %c0_10 = arith.constant 0 : index
    %c0_11 = arith.constant 0 : index
    %c0_12 = arith.constant 0 : index
    %7 = vector.load %arg4[%c0_9, %c0_10, %c0_11, %c0_12] : memref<2x4x8x32xbf16, #tpu.memory_space<vmem>>, vector<1x4x8x32xbf16>
    %8 = vector.shape_cast %7 : vector<1x4x8x32xbf16> to vector<4x8x32xbf16>
    %c0_13 = arith.constant 0 : index
    %c0_14 = arith.constant 0 : index
    %c0_15 = arith.constant 0 : index
    %9 = vector.load %arg5[%c0_13, %c0_14, %c0_15] : memref<2x1x32xf32, #tpu.memory_space<vmem>>, vector<1x1x32xf32>
    %10 = vector.shape_cast %9 : vector<1x1x32xf32> to vector<1x32xf32>
    %c0_16 = arith.constant 0 : index
    %c0_17 = arith.constant 0 : index
    %c0_18 = arith.constant 0 : index
    %11 = vector.load %arg6[%c0_16, %c0_17, %c0_18] : memref<2x1x32xf32, #tpu.memory_space<vmem>>, vector<1x1x32xf32>
    %12 = vector.shape_cast %11 : vector<1x1x32xf32> to vector<1x32xf32>
    %c0_19 = arith.constant 0 : index
    %c0_20 = arith.constant 0 : index
    %c0_21 = arith.constant 0 : index
    %13 = vector.load %arg7[%c0_19, %c0_20, %c0_21] : memref<2x1x32xf32, #tpu.memory_space<vmem>>, vector<1x1x32xf32>
    %14 = vector.shape_cast %13 : vector<1x1x32xf32> to vector<1x32xf32>
    %15 = arith.truncf %2 : vector<16x32xf32> to vector<16x32xbf16>
    %cst = arith.constant dense<0.000000e+00> : vector<16x96xf32>
    %16 = tpu.matmul %15, %4, %cst {dimension_numbers = #tpu.dot_dimension_numbers<[1], [0], [0], [1], [0, 0, 1, 1], [], []>} : vector<16x32xbf16>, vector<32x96xbf16>, vector<16x96xf32> -> vector<16x96xf32>
    %17 = vector.broadcast %6 : vector<1x96xf32> to vector<16x96xf32>
    %18 = arith.addf %16, %17 : vector<16x96xf32>
    %19 = vector.extract_strided_slice %18 {offsets = [0, 0], sizes = [16, 8], strides = [1, 1]} : vector<16x96xf32> to vector<16x8xf32>
    %20 = vector.extract_strided_slice %18 {offsets = [0, 8], sizes = [16, 8], strides = [1, 1]} : vector<16x96xf32> to vector<16x8xf32>
    %21 = vector.extract_strided_slice %18 {offsets = [0, 16], sizes = [16, 8], strides = [1, 1]} : vector<16x96xf32> to vector<16x8xf32>
    %22 = vector.extract_strided_slice %18 {offsets = [0, 24], sizes = [16, 8], strides = [1, 1]} : vector<16x96xf32> to vector<16x8xf32>
    %23 = vector.shape_cast %19 : vector<16x8xf32> to vector<1x16x8xf32>
    %24 = vector.shape_cast %20 : vector<16x8xf32> to vector<1x16x8xf32>
    %25 = vector.shape_cast %21 : vector<16x8xf32> to vector<1x16x8xf32>
    %26 = vector.shape_cast %22 : vector<16x8xf32> to vector<1x16x8xf32>
    %27 = tpu.concatenate %23, %24, %25, %26 in 0 : vector<1x16x8xf32>, vector<1x16x8xf32>, vector<1x16x8xf32>, vector<1x16x8xf32> -> vector<4x16x8xf32>
    %28 = vector.shape_cast %27 : vector<4x16x8xf32> to vector<8x8x8xf32>
    %29 = arith.truncf %28 : vector<8x8x8xf32> to vector<8x8x8xbf16>
    %30 = vector.extract_strided_slice %18 {offsets = [0, 32], sizes = [16, 8], strides = [1, 1]} : vector<16x96xf32> to vector<16x8xf32>
    %31 = vector.extract_strided_slice %18 {offsets = [0, 40], sizes = [16, 8], strides = [1, 1]} : vector<16x96xf32> to vector<16x8xf32>
    %32 = vector.extract_strided_slice %18 {offsets = [0, 48], sizes = [16, 8], strides = [1, 1]} : vector<16x96xf32> to vector<16x8xf32>
    %33 = vector.extract_strided_slice %18 {offsets = [0, 56], sizes = [16, 8], strides = [1, 1]} : vector<16x96xf32> to vector<16x8xf32>
    %34 = vector.shape_cast %30 : vector<16x8xf32> to vector<1x16x8xf32>
    %35 = vector.shape_cast %31 : vector<16x8xf32> to vector<1x16x8xf32>
    %36 = vector.shape_cast %32 : vector<16x8xf32> to vector<1x16x8xf32>
    %37 = vector.shape_cast %33 : vector<16x8xf32> to vector<1x16x8xf32>
    %38 = tpu.concatenate %34, %35, %36, %37 in 0 : vector<1x16x8xf32>, vector<1x16x8xf32>, vector<1x16x8xf32>, vector<1x16x8xf32> -> vector<4x16x8xf32>
    %39 = vector.shape_cast %38 : vector<4x16x8xf32> to vector<8x8x8xf32>
    %40 = arith.truncf %39 : vector<8x8x8xf32> to vector<8x8x8xbf16>
    %41 = vector.extract_strided_slice %18 {offsets = [0, 64], sizes = [16, 8], strides = [1, 1]} : vector<16x96xf32> to vector<16x8xf32>
    %42 = vector.extract_strided_slice %18 {offsets = [0, 72], sizes = [16, 8], strides = [1, 1]} : vector<16x96xf32> to vector<16x8xf32>
    %43 = vector.extract_strided_slice %18 {offsets = [0, 80], sizes = [16, 8], strides = [1, 1]} : vector<16x96xf32> to vector<16x8xf32>
    %44 = vector.extract_strided_slice %18 {offsets = [0, 88], sizes = [16, 8], strides = [1, 1]} : vector<16x96xf32> to vector<16x8xf32>
    %45 = vector.shape_cast %41 : vector<16x8xf32> to vector<1x16x8xf32>
    %46 = vector.shape_cast %42 : vector<16x8xf32> to vector<1x16x8xf32>
    %47 = vector.shape_cast %43 : vector<16x8xf32> to vector<1x16x8xf32>
    %48 = vector.shape_cast %44 : vector<16x8xf32> to vector<1x16x8xf32>
    %49 = tpu.concatenate %45, %46, %47, %48 in 0 : vector<1x16x8xf32>, vector<1x16x8xf32>, vector<1x16x8xf32>, vector<1x16x8xf32> -> vector<4x16x8xf32>
    %50 = vector.shape_cast %49 : vector<4x16x8xf32> to vector<8x8x8xf32>
    %51 = arith.truncf %50 : vector<8x8x8xf32> to vector<8x8x8xbf16>
    %cst_22 = arith.constant dense<0.000000e+00> : vector<8x8x8xf32>
    %52 = tpu.matmul %29, %40, %cst_22 {dimension_numbers = #tpu.dot_dimension_numbers<[2], [2], [1], [1], [0, 0, 0, 1, 1, 1], [0], [0]>} : vector<8x8x8xbf16>, vector<8x8x8xbf16>, vector<8x8x8xf32> -> vector<8x8x8xf32>
    %cst_23 = arith.constant dense<0xFF800000> : vector<8x8xf32>
    %53 = vector.multi_reduction <maximumf>, %52, %cst_23 [2] : vector<8x8x8xf32> to vector<8x8xf32>
    %54 = vector.shape_cast %53 : vector<8x8xf32> to vector<8x8x1xf32>
    %55 = vector.broadcast %54 : vector<8x8x1xf32> to vector<8x8x8xf32>
    %56 = arith.subf %52, %55 : vector<8x8x8xf32>
    %57 = math.exp %56 : vector<8x8x8xf32>
    %cst_24 = arith.constant dense<0.000000e+00> : vector<8x8xf32>
    %58 = vector.multi_reduction <add>, %57, %cst_24 [2] : vector<8x8x8xf32> to vector<8x8xf32>
    %59 = vector.shape_cast %58 : vector<8x8xf32> to vector<8x8x1xf32>
    %60 = vector.broadcast %59 : vector<8x8x1xf32> to vector<8x8x8xf32>
    %61 = arith.divf %57, %60 : vector<8x8x8xf32>
    %62 = arith.truncf %61 : vector<8x8x8xf32> to vector<8x8x8xbf16>
    %cst_25 = arith.constant dense<0.000000e+00> : vector<8x8x8xf32>
    %63 = tpu.matmul %62, %51, %cst_25 {dimension_numbers = #tpu.dot_dimension_numbers<[2], [1], [1], [2], [0, 0, 0, 1, 1, 2], [0], [0]>} : vector<8x8x8xbf16>, vector<8x8x8xbf16>, vector<8x8x8xf32> -> vector<8x8x8xf32>
    %64 = vector.shape_cast %63 : vector<8x8x8xf32> to vector<4x16x8xf32>
    %65 = arith.truncf %64 : vector<4x16x8xf32> to vector<4x16x8xbf16>
    %cst_26 = arith.constant dense<0.000000e+00> : vector<4x16x32xf32>
    %66 = tpu.matmul %65, %8, %cst_26 {dimension_numbers = #tpu.dot_dimension_numbers<[2], [1], [1], [2], [0, 0, 0, 1, 1, 2], [0], [0]>} : vector<4x16x8xbf16>, vector<4x8x32xbf16>, vector<4x16x32xf32> -> vector<4x16x32xf32>
    %cst_27 = arith.constant dense<0.000000e+00> : vector<16x32xf32>
    %67 = vector.multi_reduction <add>, %66, %cst_27 [0] : vector<4x16x32xf32> to vector<16x32xf32>
    %68 = vector.broadcast %10 : vector<1x32xf32> to vector<16x32xf32>
    %69 = arith.addf %67, %68 : vector<16x32xf32>
    %70 = arith.addf %69, %2 : vector<16x32xf32>
    %cst_28 = arith.constant dense<0.000000e+00> : vector<16xf32>
    %71 = vector.multi_reduction <add>, %70, %cst_28 [1] : vector<16x32xf32> to vector<16xf32>
    %72 = vector.shape_cast %71 : vector<16xf32> to vector<16x1xf32>
    %cst_29 = arith.constant 3.200000e+01 : f32
    %73 = vector.broadcast %cst_29 : f32 to vector<16x1xf32>
    %74 = arith.divf %72, %73 : vector<16x1xf32>
    %75 = vector.broadcast %74 : vector<16x1xf32> to vector<16x32xf32>
    %76 = arith.subf %70, %75 : vector<16x32xf32>
    %77 = arith.mulf %76, %76 : vector<16x32xf32>
    %cst_30 = arith.constant dense<0.000000e+00> : vector<16xf32>
    %78 = vector.multi_reduction <add>, %77, %cst_30 [1] : vector<16x32xf32> to vector<16xf32>
    %79 = vector.shape_cast %78 : vector<16xf32> to vector<16x1xf32>
    %cst_31 = arith.constant 3.200000e+01 : f32
    %80 = vector.broadcast %cst_31 : f32 to vector<16x1xf32>
    %81 = arith.divf %79, %80 : vector<16x1xf32>
    %82 = vector.broadcast %74 : vector<16x1xf32> to vector<16x32xf32>
    %83 = arith.subf %70, %82 : vector<16x32xf32>
    %cst_32 = arith.constant 9.99999974E-6 : f32
    %84 = vector.broadcast %cst_32 : f32 to vector<16x1xf32>
    %85 = arith.addf %81, %84 : vector<16x1xf32>
    %86 = math.rsqrt %85 : vector<16x1xf32>
    %87 = vector.broadcast %86 : vector<16x1xf32> to vector<16x32xf32>
    %88 = arith.mulf %83, %87 : vector<16x32xf32>
    %89 = vector.broadcast %12 : vector<1x32xf32> to vector<16x32xf32>
    %90 = arith.mulf %88, %89 : vector<16x32xf32>
    %91 = vector.broadcast %14 : vector<1x32xf32> to vector<16x32xf32>
    %92 = arith.addf %90, %91 : vector<16x32xf32>
    %cst_33 = arith.constant 5.000000e-01 : f32
    %93 = vector.broadcast %cst_33 : f32 to vector<16x32xf32>
    %94 = arith.mulf %93, %92 : vector<16x32xf32>
    %cst_34 = arith.constant 0.707106769 : f32
    %95 = vector.broadcast %cst_34 : f32 to vector<16x32xf32>
    %96 = arith.mulf %92, %95 : vector<16x32xf32>
    %97 = math.erf %96 : vector<16x32xf32>
    %cst_35 = arith.constant 1.000000e+00 : f32
    %98 = vector.broadcast %cst_35 : f32 to vector<16x32xf32>
    %99 = arith.addf %98, %97 : vector<16x32xf32>
    %100 = arith.mulf %94, %99 : vector<16x32xf32>
    %c1 = arith.constant 1 : index
    %c0_36 = arith.constant 0 : index
    %c0_37 = arith.constant 0 : index
    %101 = vector.load %arg2[%c1, %c0_36, %c0_37] : memref<2x32x96xbf16, #tpu.memory_space<vmem>>, vector<1x32x96xbf16>
    %102 = vector.shape_cast %101 : vector<1x32x96xbf16> to vector<32x96xbf16>
    %c1_38 = arith.constant 1 : index
    %c0_39 = arith.constant 0 : index
    %c0_40 = arith.constant 0 : index
    %103 = vector.load %arg3[%c1_38, %c0_39, %c0_40] : memref<2x1x96xf32, #tpu.memory_space<vmem>>, vector<1x1x96xf32>
    %104 = vector.shape_cast %103 : vector<1x1x96xf32> to vector<1x96xf32>
    %c1_41 = arith.constant 1 : index
    %c0_42 = arith.constant 0 : index
    %c0_43 = arith.constant 0 : index
    %c0_44 = arith.constant 0 : index
    %105 = vector.load %arg4[%c1_41, %c0_42, %c0_43, %c0_44] : memref<2x4x8x32xbf16, #tpu.memory_space<vmem>>, vector<1x4x8x32xbf16>
    %106 = vector.shape_cast %105 : vector<1x4x8x32xbf16> to vector<4x8x32xbf16>
    %c1_45 = arith.constant 1 : index
    %c0_46 = arith.constant 0 : index
    %c0_47 = arith.constant 0 : index
    %107 = vector.load %arg5[%c1_45, %c0_46, %c0_47] : memref<2x1x32xf32, #tpu.memory_space<vmem>>, vector<1x1x32xf32>
    %108 = vector.shape_cast %107 : vector<1x1x32xf32> to vector<1x32xf32>
    %c1_48 = arith.constant 1 : index
    %c0_49 = arith.constant 0 : index
    %c0_50 = arith.constant 0 : index
    %109 = vector.load %arg6[%c1_48, %c0_49, %c0_50] : memref<2x1x32xf32, #tpu.memory_space<vmem>>, vector<1x1x32xf32>
    %110 = vector.shape_cast %109 : vector<1x1x32xf32> to vector<1x32xf32>
    %c1_51 = arith.constant 1 : index
    %c0_52 = arith.constant 0 : index
    %c0_53 = arith.constant 0 : index
    %111 = vector.load %arg7[%c1_51, %c0_52, %c0_53] : memref<2x1x32xf32, #tpu.memory_space<vmem>>, vector<1x1x32xf32>
    %112 = vector.shape_cast %111 : vector<1x1x32xf32> to vector<1x32xf32>
    %113 = arith.truncf %100 : vector<16x32xf32> to vector<16x32xbf16>
    %cst_54 = arith.constant dense<0.000000e+00> : vector<16x96xf32>
    %114 = tpu.matmul %113, %102, %cst_54 {dimension_numbers = #tpu.dot_dimension_numbers<[1], [0], [0], [1], [0, 0, 1, 1], [], []>} : vector<16x32xbf16>, vector<32x96xbf16>, vector<16x96xf32> -> vector<16x96xf32>
    %115 = vector.broadcast %104 : vector<1x96xf32> to vector<16x96xf32>
    %116 = arith.addf %114, %115 : vector<16x96xf32>
    %117 = vector.extract_strided_slice %116 {offsets = [0, 0], sizes = [16, 8], strides = [1, 1]} : vector<16x96xf32> to vector<16x8xf32>
    %118 = vector.extract_strided_slice %116 {offsets = [0, 8], sizes = [16, 8], strides = [1, 1]} : vector<16x96xf32> to vector<16x8xf32>
    %119 = vector.extract_strided_slice %116 {offsets = [0, 16], sizes = [16, 8], strides = [1, 1]} : vector<16x96xf32> to vector<16x8xf32>
    %120 = vector.extract_strided_slice %116 {offsets = [0, 24], sizes = [16, 8], strides = [1, 1]} : vector<16x96xf32> to vector<16x8xf32>
    %121 = vector.shape_cast %117 : vector<16x8xf32> to vector<1x16x8xf32>
    %122 = vector.shape_cast %118 : vector<16x8xf32> to vector<1x16x8xf32>
    %123 = vector.shape_cast %119 : vector<16x8xf32> to vector<1x16x8xf32>
    %124 = vector.shape_cast %120 : vector<16x8xf32> to vector<1x16x8xf32>
    %125 = tpu.concatenate %121, %122, %123, %124 in 0 : vector<1x16x8xf32>, vector<1x16x8xf32>, vector<1x16x8xf32>, vector<1x16x8xf32> -> vector<4x16x8xf32>
    %126 = vector.shape_cast %125 : vector<4x16x8xf32> to vector<8x8x8xf32>
    %127 = arith.truncf %126 : vector<8x8x8xf32> to vector<8x8x8xbf16>
    %128 = vector.extract_strided_slice %116 {offsets = [0, 32], sizes = [16, 8], strides = [1, 1]} : vector<16x96xf32> to vector<16x8xf32>
    %129 = vector.extract_strided_slice %116 {offsets = [0, 40], sizes = [16, 8], strides = [1, 1]} : vector<16x96xf32> to vector<16x8xf32>
    %130 = vector.extract_strided_slice %116 {offsets = [0, 48], sizes = [16, 8], strides = [1, 1]} : vector<16x96xf32> to vector<16x8xf32>
    %131 = vector.extract_strided_slice %116 {offsets = [0, 56], sizes = [16, 8], strides = [1, 1]} : vector<16x96xf32> to vector<16x8xf32>
    %132 = vector.shape_cast %128 : vector<16x8xf32> to vector<1x16x8xf32>
    %133 = vector.shape_cast %129 : vector<16x8xf32> to vector<1x16x8xf32>
    %134 = vector.shape_cast %130 : vector<16x8xf32> to vector<1x16x8xf32>
    %135 = vector.shape_cast %131 : vector<16x8xf32> to vector<1x16x8xf32>
    %136 = tpu.concatenate %132, %133, %134, %135 in 0 : vector<1x16x8xf32>, vector<1x16x8xf32>, vector<1x16x8xf32>, vector<1x16x8xf32> -> vector<4x16x8xf32>
    %137 = vector.shape_cast %136 : vector<4x16x8xf32> to vector<8x8x8xf32>
    %138 = arith.truncf %137 : vector<8x8x8xf32> to vector<8x8x8xbf16>
    %139 = vector.extract_strided_slice %116 {offsets = [0, 64], sizes = [16, 8], strides = [1, 1]} : vector<16x96xf32> to vector<16x8xf32>
    %140 = vector.extract_strided_slice %116 {offsets = [0, 72], sizes = [16, 8], strides = [1, 1]} : vector<16x96xf32> to vector<16x8xf32>
    %141 = vector.extract_strided_slice %116 {offsets = [0, 80], sizes = [16, 8], strides = [1, 1]} : vector<16x96xf32> to vector<16x8xf32>
    %142 = vector.extract_strided_slice %116 {offsets = [0, 88], sizes = [16, 8], strides = [1, 1]} : vector<16x96xf32> to vector<16x8xf32>
    %143 = vector.shape_cast %139 : vector<16x8xf32> to vector<1x16x8xf32>
    %144 = vector.shape_cast %140 : vector<16x8xf32> to vector<1x16x8xf32>
    %145 = vector.shape_cast %141 : vector<16x8xf32> to vector<1x16x8xf32>
    %146 = vector.shape_cast %142 : vector<16x8xf32> to vector<1x16x8xf32>
    %147 = tpu.concatenate %143, %144, %145, %146 in 0 : vector<1x16x8xf32>, vector<1x16x8xf32>, vector<1x16x8xf32>, vector<1x16x8xf32> -> vector<4x16x8xf32>
    %148 = vector.shape_cast %147 : vector<4x16x8xf32> to vector<8x8x8xf32>
    %149 = arith.truncf %148 : vector<8x8x8xf32> to vector<8x8x8xbf16>
    %cst_55 = arith.constant dense<0.000000e+00> : vector<8x8x8xf32>
    %150 = tpu.matmul %127, %138, %cst_55 {dimension_numbers = #tpu.dot_dimension_numbers<[2], [2], [1], [1], [0, 0, 0, 1, 1, 1], [0], [0]>} : vector<8x8x8xbf16>, vector<8x8x8xbf16>, vector<8x8x8xf32> -> vector<8x8x8xf32>
    %cst_56 = arith.constant dense<0xFF800000> : vector<8x8xf32>
    %151 = vector.multi_reduction <maximumf>, %150, %cst_56 [2] : vector<8x8x8xf32> to vector<8x8xf32>
    %152 = vector.shape_cast %151 : vector<8x8xf32> to vector<8x8x1xf32>
    %153 = vector.broadcast %152 : vector<8x8x1xf32> to vector<8x8x8xf32>
    %154 = arith.subf %150, %153 : vector<8x8x8xf32>
    %155 = math.exp %154 : vector<8x8x8xf32>
    %cst_57 = arith.constant dense<0.000000e+00> : vector<8x8xf32>
    %156 = vector.multi_reduction <add>, %155, %cst_57 [2] : vector<8x8x8xf32> to vector<8x8xf32>
    %157 = vector.shape_cast %156 : vector<8x8xf32> to vector<8x8x1xf32>
    %158 = vector.broadcast %157 : vector<8x8x1xf32> to vector<8x8x8xf32>
    %159 = arith.divf %155, %158 : vector<8x8x8xf32>
    %160 = arith.truncf %159 : vector<8x8x8xf32> to vector<8x8x8xbf16>
    %cst_58 = arith.constant dense<0.000000e+00> : vector<8x8x8xf32>
    %161 = tpu.matmul %160, %149, %cst_58 {dimension_numbers = #tpu.dot_dimension_numbers<[2], [1], [1], [2], [0, 0, 0, 1, 1, 2], [0], [0]>} : vector<8x8x8xbf16>, vector<8x8x8xbf16>, vector<8x8x8xf32> -> vector<8x8x8xf32>
    %162 = vector.shape_cast %161 : vector<8x8x8xf32> to vector<4x16x8xf32>
    %163 = arith.truncf %162 : vector<4x16x8xf32> to vector<4x16x8xbf16>
    %cst_59 = arith.constant dense<0.000000e+00> : vector<4x16x32xf32>
    %164 = tpu.matmul %163, %106, %cst_59 {dimension_numbers = #tpu.dot_dimension_numbers<[2], [1], [1], [2], [0, 0, 0, 1, 1, 2], [0], [0]>} : vector<4x16x8xbf16>, vector<4x8x32xbf16>, vector<4x16x32xf32> -> vector<4x16x32xf32>
    %cst_60 = arith.constant dense<0.000000e+00> : vector<16x32xf32>
    %165 = vector.multi_reduction <add>, %164, %cst_60 [0] : vector<4x16x32xf32> to vector<16x32xf32>
    %166 = vector.broadcast %108 : vector<1x32xf32> to vector<16x32xf32>
    %167 = arith.addf %165, %166 : vector<16x32xf32>
    %168 = arith.addf %167, %100 : vector<16x32xf32>
    %cst_61 = arith.constant dense<0.000000e+00> : vector<16xf32>
    %169 = vector.multi_reduction <add>, %168, %cst_61 [1] : vector<16x32xf32> to vector<16xf32>
    %170 = vector.shape_cast %169 : vector<16xf32> to vector<16x1xf32>
    %cst_62 = arith.constant 3.200000e+01 : f32
    %171 = vector.broadcast %cst_62 : f32 to vector<16x1xf32>
    %172 = arith.divf %170, %171 : vector<16x1xf32>
    %173 = vector.broadcast %172 : vector<16x1xf32> to vector<16x32xf32>
    %174 = arith.subf %168, %173 : vector<16x32xf32>
    %175 = arith.mulf %174, %174 : vector<16x32xf32>
    %cst_63 = arith.constant dense<0.000000e+00> : vector<16xf32>
    %176 = vector.multi_reduction <add>, %175, %cst_63 [1] : vector<16x32xf32> to vector<16xf32>
    %177 = vector.shape_cast %176 : vector<16xf32> to vector<16x1xf32>
    %cst_64 = arith.constant 3.200000e+01 : f32
    %178 = vector.broadcast %cst_64 : f32 to vector<16x1xf32>
    %179 = arith.divf %177, %178 : vector<16x1xf32>
    %180 = vector.broadcast %172 : vector<16x1xf32> to vector<16x32xf32>
    %181 = arith.subf %168, %180 : vector<16x32xf32>
    %cst_65 = arith.constant 9.99999974E-6 : f32
    %182 = vector.broadcast %cst_65 : f32 to vector<16x1xf32>
    %183 = arith.addf %179, %182 : vector<16x1xf32>
    %184 = math.rsqrt %183 : vector<16x1xf32>
    %185 = vector.broadcast %184 : vector<16x1xf32> to vector<16x32xf32>
    %186 = arith.mulf %181, %185 : vector<16x32xf32>
    %187 = vector.broadcast %110 : vector<1x32xf32> to vector<16x32xf32>
    %188 = arith.mulf %186, %187 : vector<16x32xf32>
    %189 = vector.broadcast %112 : vector<1x32xf32> to vector<16x32xf32>
    %190 = arith.addf %188, %189 : vector<16x32xf32>
    %cst_66 = arith.constant 5.000000e-01 : f32
    %191 = vector.broadcast %cst_66 : f32 to vector<16x32xf32>
    %192 = arith.mulf %191, %190 : vector<16x32xf32>
    %cst_67 = arith.constant 0.707106769 : f32
    %193 = vector.broadcast %cst_67 : f32 to vector<16x32xf32>
    %194 = arith.mulf %190, %193 : vector<16x32xf32>
    %195 = math.erf %194 : vector<16x32xf32>
    %cst_68 = arith.constant 1.000000e+00 : f32
    %196 = vector.broadcast %cst_68 : f32 to vector<16x32xf32>
    %197 = arith.addf %196, %195 : vector<16x32xf32>
    %198 = arith.mulf %192, %197 : vector<16x32xf32>
    %199 = arith.truncf %198 : vector<16x32xf32> to vector<16x32xbf16>
    %c0_69 = arith.constant 0 : index
    %c0_70 = arith.constant 0 : index
    %200 = vector.load %arg8[%c0_69, %c0_70] : memref<32x128xbf16, #tpu.memory_space<vmem>>, vector<32x128xbf16>
    %cst_71 = arith.constant dense<0.000000e+00> : vector<16x128xf32>
    %201 = tpu.matmul %199, %200, %cst_71 {dimension_numbers = #tpu.dot_dimension_numbers<[1], [0], [0], [1], [0, 0, 1, 1], [], []>} : vector<16x32xbf16>, vector<32x128xbf16>, vector<16x128xf32> -> vector<16x128xf32>
    %c0_72 = arith.constant 0 : index
    %c0_73 = arith.constant 0 : index
    %202 = vector.load %arg9[%c0_72, %c0_73] : memref<1x128xf32, #tpu.memory_space<vmem>>, vector<1x128xf32>
    %203 = vector.broadcast %202 : vector<1x128xf32> to vector<16x128xf32>
    %204 = arith.addf %201, %203 : vector<16x128xf32>
    %c0_74 = arith.constant 0 : index
    %c0_75 = arith.constant 0 : index
    %205 = vector.load %arg10[%c0_74, %c0_75] : memref<16x128xf32, #tpu.memory_space<vmem>>, vector<16x128xf32>
    tpu.vector_store %arg10[%c0_74, %c0_75], %204 {strides = array<i32>} : memref<16x128xf32, #tpu.memory_space<vmem>>, vector<16x128xf32>,
    return
  }
}

</mosaic_0001>

<bundles_post_ra>
// kernel: _lambda_.1
= control target key start
LH: loop header
LB: loop body
LE: loop exit
PB: predicated region body
PF: predicated region fallthrough
CT: control target
= control target key end

     0   :  { %15 = vsyncpa [#allocation3], 0  ;;  %s3813_s0 = inlined_call_operand.vmem [shape: f32[16,32], index: 0, kind: input, shape index: {}]   ;;  %s3814_s1 = inlined_call_operand.vmem [shape: f32[16,32], index: 1, kind: input, shape index: {}]   ;;  %s3815_s2 = inlined_call_operand.vmem [shape: bf16[2,32,96], index: 2, kind: input, shape index: {}]   ;;  %s3816_s3 = inlined_call_operand.vmem [shape: f32[2,1,96], index: 3, kind: input, shape index: {}]   ;;  %s3817_s4 = inlined_call_operand.hbm [shape: bf16[2,4,8,32], index: 4, kind: input, shape index: {}]   ;;  %s3818_s5 = inlined_call_operand.vmem [shape: f32[2,1,32], index: 5, kind: input, shape index: {}]   ;;  %s3819_s6 = inlined_call_operand.vmem [shape: f32[2,1,32], index: 6, kind: input, shape index: {}]   ;;  %s3820_s7 = inlined_call_operand.vmem [shape: f32[2,1,32], index: 7, kind: input, shape index: {}]   ;;  %s3821_s8 = inlined_call_operand.hbm [shape: bf16[32,128], index: 8, kind: input, shape index: {}]   ;;  %s3822_s9 = inlined_call_operand.vmem [shape: f32[1,128], index: 9, kind: input, shape index: {}]   ;;  %s3823_s10 = inlined_call_operand.vmem [shape: f32[16,128], index: 10, kind: output, shape index: {}]  }
   0x1   :  { %16 = vsyncpa [#allocation5], 0  ;;  %s3231_s13 = smov [#allocation2]  }
   0x2   :  { %s30_s14 = sshll.u32 %s3231_s13, 4  ;;  %s31_s14 = int_to_ptr.vmem [resolvable:$true] %s30_s14 }
   0x3   :  { %s3195_s15 = scalar_lea.vmem %s31_s14, 512  ;;  %p3200_p1 = scmp.lt.s32.totalorder %s31_s14, %s31_s14 }
   0x4   :  { %p3196_p0 = scmp.ne.s32.totalorder %s31_s14, %s3195_s15  ;;  %p3201_p2 = scmp.lt.s32.totalorder %s3195_s15, %s3195_s15 }
   0x6   :  { %p3202_p3 = por %p3201_p2, %p3200_p1 }
   0x8   :  { %p3203_p4 = pnand %p3202_p3, %p3196_p0 }
   0xa   :  { %3206 = shalt.err (!%p3203_p4)
}
   0xb   :  { %s3232_s16 = smov 64   ;;  %s3233_s17 = smov 4  }
   0xc   :  { %36 = dma.hbm_to_vmem [thread:$0]  %s3817_s4, 512, %s31_s14, [#allocation3], %s3232_s16, %s3232_s16, %s3233_s17  }
   0xd   :  { %s3234_s20 = smov [#allocation4]  }
   0xe   :  { %s48_s21 = sshll.u32 %s3234_s20, 4  ;;  %s49_s21 = int_to_ptr.vmem [resolvable:$true] %s48_s21 }
   0xf   :  { %s3215_s22 = scalar_lea.vmem %s49_s21, 256  ;;  %p3220_p6 = scmp.lt.s32.totalorder %s49_s21, %s49_s21 }
  0x10   :  { %p3216_p5 = scmp.ne.s32.totalorder %s49_s21, %s3215_s22  ;;  %p3221_p7 = scmp.lt.s32.totalorder %s3215_s22, %s3215_s22 }
  0x12   :  { %p3222_p8 = por %p3221_p7, %p3220_p6 }
  0x14   :  { %p3223_p9 = pnand %p3222_p8, %p3216_p5 }
  0x16   :  { %3226 = shalt.err (!%p3223_p9)
}
  0x17   :  { %54 = dma.hbm_to_vmem [thread:$0]  %s3821_s8, 256, %s49_s21, [#allocation5], %s3232_s16, %s3232_s16, %s3233_s17  }
  0x18   :  { %3227 = dma.done.wait [#allocation3], 512  }
  0x19   :  { %3228 = vsyncadd [#allocation3], 4294966784 }
  0x1a   :  { %3229 = dma.done.wait [#allocation5], 256  }
  0x1b   :  { %3230 = vsyncadd [#allocation5], 4294967040  ;;  %v3235_v0 = vmov 0.0   ;;  %vm3236_vm0 = vmmov 0   ;;  %v3101_v1 = vld [vmem:[%s3815_s2 + $0x8] sm:$0xff]   ;;  %v3102_v2 = vld [vmem:[%s3815_s2] sm:$0xff]  }
  0x1c   :  { %2797 = vmatprep.subr.bf16.mxu0 %v3235_v0  ;;  %2801 = vmatprep.mubr.msk.bf16.mxu0 %vm3236_vm0, %v3235_v0  ;;  %v64_v3 = vld [vmem:[%s3813_s0] sm:$0xff]  ;;  %v65_v4 = vld [vmem:[%s3813_s0 + $0x8] sm:$0xff]  ;;  %vm101_vm1 = vcmask 261120   ;;  %s3238_s17 = smov 120   ;;  %s3239_s18 = smov 96   ;;  %vm177_vm2 = vcmask 64512  }
  0x1d   :  { %2805 = vmatprep.subr.bf16.mxu1 %v3235_v0  ;;  %2807 = vmatprep.mubr.msk.bf16.mxu1 %vm3236_vm0, %v3235_v0  ;;  %v66_v5 = vld [vmem:[%s3814_s1] sm:$0xff]  ;;  %v67_v6 = vld [vmem:[%s3814_s1 + $0x8] sm:$0xff]  ;;  %s3237_s1 = smov 104   ;;  %s3240_s19 = smov 112   ;;  %vm668_vm3 = vcmask 1043456  }
  0x1e   :  { %2798 = vmatpush3.bf16.msra.mxu0 %v3101_v1  ;;  %v3331_v7 = vadd.f32 %v66_v5, %v64_v3  ;;  %v3333_v8 = vadd.f32 %v67_v6, %v65_v4  ;;  %v2642_v11 = vld [vmem:[%s3816_s3] ss:$0 sm:$0xff] }
  0x1f   :  { %2799 = vmatprep.subr.bf16.mxu0 %v3235_v0 }
  0x20   :  { %v82_v9 = vpack.c.bf16 %v3333_v8, %v3331_v7 }
  0x22   :  { %2800 = vmatpush3.bf16.msra.mxu0 %v3102_v2 }
  0x23   :  { %2811 = vmatprep.subr.bf16.mxu0 %v3235_v0 }
  0x25   :  { %2802 = vmatmul.mubr.msk.bf16.vlgmr.msra.gmra.mxu0 %vm101_vm1, %v82_v9 }
  0x26   :  { %2813 = vmatprep.mubr.msk.bf16.mxu0 %vm3236_vm0, %v3235_v0 }
  0xe5   :  { %v139_v10 = vpop.f32.mrf.mxu0 }
  0xe6   :  { %v140_v14 = vadd.f32 %v2642_v11, %v139_v10 }
  0xe7   :  { %v2803_v12 = vpop.f32.mrf.mxu0 }
  0xe8   :  { %v166_v18 = vpack.c.bf16 %v140_v14, %v140_v14 }
  0xe9   :  { %v142_v13 = vpop.f32.mrf.mxu0 }
  0xea   :  { %v143_v15 = vadd.f32 %v2642_v11, %v142_v13 }
  0xeb   :  { %v2804_v16 = vpop.f32.mrf.mxu0 }
  0xec   :  { %v3081_v17 = vpack.i.bf16 %v143_v15, %v140_v14  ;;  %v167_v19 = vpack.c.bf16 %v143_v15, %v143_v15 }
  0xee   :  { %3082 = vrot.lane.b32.xlu1 %v3081_v17, %s3237_s1  ;;  %3072 = vrot.lane.b32.xlu0 %v3081_v17, %s3238_s17 }
  0xf2   :  { %175 = vrot.lane.b32.xlu1 %v166_v18, %s3239_s18  ;;  %3077 = vrot.lane.b32.xlu0 %v3081_v17, %s3240_s19 }
  0xf6   :  { %225 = vrot.lane.b32.xlu0 %v167_v19, %s3239_s18 }
 0x160   :  { %v3083_v20 = vpop.permute.xlu1 %3082  ;;  %v3073_v21 = vpop.permute.xlu0 %3072 }
 0x161   :  { %v3075_v22 = vunpack.i.h.bf16 %v3073_v21  ;;  %v3074_v23 = vunpack.i.l.bf16 %v3073_v21  ;;  %v3084_v31 = vunpack.i.l.bf16 %v3083_v20  ;;  %v3085_v34 = vunpack.i.h.bf16 %v3083_v20 }
 0x163   :  { %v3349_v24 = vpack.c.bf16 %v3075_v22, %v3075_v22  ;;  %v3351_v25 = vpack.c.bf16 %v3074_v23, %v3074_v23  ;;  %v3368_v37 = vpack.c.bf16 %v3084_v31, %v3084_v31  ;;  %v3371_v38 = vpack.c.bf16 %v3085_v34, %v3085_v34 }
 0x164   :  { %v176_v26 = vpop.permute.xlu1 %175  ;;  %v3078_v27 = vpop.permute.xlu0 %3077 }
 0x165   :  { %v3080_v28 = vunpack.i.h.bf16 %v3078_v27  ;;  %v3079_v29 = vunpack.i.l.bf16 %v3078_v27  ;;  %274 = vrot.lane.b32.xlu1 %v3351_v25, %s3239_s18  ;;  %323 = vrot.lane.b32.xlu0 %v3349_v24, %s3239_s18  ;;  %v182_v30 = vsel %vm177_vm2, %v176_v26, 0 }
 0x166   :  { %2806 = vmatpush3.bf16.xpose.msra.mxu1 %v182_v30 }
 0x167   :  { %v3358_v32 = vpack.c.bf16 %v3080_v28, %v3080_v28  ;;  %v3360_v33 = vpack.c.bf16 %v3079_v29, %v3079_v29  ;;  %2817 = vmatprep.subr.bf16.mxu1 %v3235_v0 }
 0x168   :  { %v226_v35 = vpop.permute.xlu0 %225 }
 0x169   :  { %v231_v36 = vsel %vm177_vm2, %v226_v35, 0  ;;  %372 = vrot.lane.b32.xlu1 %v3360_v33, %s3239_s18  ;;  %421 = vrot.lane.b32.xlu0 %v3358_v32, %s3239_s18 }
 0x16a   :  { %2812 = vmatpush3.bf16.xpose.msra.mxu0 %v231_v36 }
 0x16b   :  { %2823 = vmatprep.subr.bf16.mxu0 %v3235_v0 }
 0x16d   :  { %2808 = vmatmul.mubr.msk.bf16.vlgmr.msra.gmra.mxu1 %vm177_vm2, %v166_v18  ;;  %470 = vrot.lane.b32.xlu1 %v3368_v37, %s3239_s18 }
 0x16e   :  { %519 = vrot.lane.b32.xlu0 %v3371_v38, %s3239_s18  ;;  %2819 = vmatprep.mubr.msk.bf16.mxu1 %vm3236_vm0, %v3235_v0 }
 0x171   :  { %712 = vrot.lane.b32.xlu1 %v167_v19, %s3232_s16  ;;  %2814 = vmatmul.mubr.msk.bf16.vlgmr.msra.gmra.mxu0 %vm177_vm2, %v167_v19 }
 0x172   :  { %663 = vrot.lane.b32.xlu0 %v166_v18, %s3232_s16  ;;  %2825 = vmatprep.mubr.msk.bf16.mxu0 %vm3236_vm0, %v3235_v0 }
 0x1d7   :  { %v275_v39 = vpop.permute.xlu1 %274  ;;  %v324_v40 = vpop.permute.xlu0 %323 }
 0x1d8   :  { %v280_v41 = vsel %vm177_vm2, %v275_v39, 0  ;;  %v329_v42 = vsel %vm177_vm2, %v324_v40, 0 }
 0x1d9   :  { %2818 = vmatpush3.bf16.xpose.msra.mxu1 %v280_v41  ;;  %2824 = vmatpush3.bf16.xpose.msra.mxu0 %v329_v42 }
 0x1da   :  { %2829 = vmatprep.subr.bf16.mxu1 %v3235_v0  ;;  %2835 = vmatprep.subr.bf16.mxu0 %v3235_v0 }
 0x1db   :  { %v373_v43 = vpop.permute.xlu1 %372  ;;  %v422_v44 = vpop.permute.xlu0 %421 }
 0x1dc   :  { %v378_v45 = vsel %vm177_vm2, %v373_v43, 0  ;;  %v427_v46 = vsel %vm177_vm2, %v422_v44, 0 }
 0x1df   :  { %v471_v47 = vpop.permute.xlu1 %470 }
 0x1e0   :  { %2820 = vmatmul.mubr.msk.bf16.vlgmr.msra.gmra.mxu1 %vm177_vm2, %v3351_v25  ;;  %2826 = vmatmul.mubr.msk.bf16.vlgmr.msra.gmra.mxu0 %vm177_vm2, %v3349_v24  ;;  %v520_v48 = vpop.permute.xlu0 %519  ;;  %v476_v49 = vsel %vm177_vm2, %v471_v47, 0 }
 0x1e1   :  { %2830 = vmatpush3.bf16.xpose.msra.mxu1 %v378_v45  ;;  %2836 = vmatpush3.bf16.xpose.msra.mxu0 %v427_v46  ;;  %v525_v50 = vsel %vm177_vm2, %v520_v48, 0 }
 0x1e2   :  { %2831 = vmatprep.mubr.msk.bf16.mxu1 %vm3236_vm0, %v3235_v0  ;;  %2837 = vmatprep.mubr.msk.bf16.mxu0 %vm3236_vm0, %v3235_v0 }
 0x1e3   :  { %2841 = vmatprep.subr.bf16.mxu1 %v3235_v0  ;;  %2847 = vmatprep.subr.bf16.mxu0 %v3235_v0  ;;  %v713_v51 = vpop.permute.xlu1 %712 }
 0x1e4   :  { %v664_v52 = vpop.permute.xlu0 %663  ;;  %v718_v53 = vsel %vm668_vm3, %v713_v51, 0 }
 0x1e5   :  { %v670_v54 = vsel %vm668_vm3, %v664_v52, 0 }
 0x1e8   :  { %2832 = vmatmul.mubr.msk.bf16.vlgmr.msra.gmra.mxu1 %vm177_vm2, %v3360_v33  ;;  %2838 = vmatmul.mubr.msk.bf16.vlgmr.msra.gmra.mxu0 %vm177_vm2, %v3358_v32 }
 0x1e9   :  { %2842 = vmatpush3.bf16.xpose.msra.mxu1 %v476_v49  ;;  %2848 = vmatpush3.bf16.xpose.msra.mxu0 %v525_v50 }
 0x1ea   :  { %2843 = vmatprep.mubr.msk.bf16.mxu1 %vm3236_vm0, %v3235_v0  ;;  %2849 = vmatprep.mubr.msk.bf16.mxu0 %vm3236_vm0, %v3235_v0 }
 0x1eb   :  { %2853 = vmatprep.subr.bf16.mxu1 %v3235_v0  ;;  %2859 = vmatprep.subr.bf16.mxu0 %v3235_v0 }
 0x1f0   :  { %2844 = vmatmul.mubr.msk.bf16.vlgmr.msra.gmra.mxu1 %vm177_vm2, %v3368_v37  ;;  %2850 = vmatmul.mubr.msk.bf16.vlgmr.msra.gmra.mxu0 %vm177_vm2, %v3371_v38 }
 0x1f1   :  { %2854 = vmatpush3.bf16.msra.mxu1 %v670_v54  ;;  %2860 = vmatpush3.bf16.msra.mxu0 %v718_v53 }
 0x1f2   :  { %2855 = vmatprep.mubr.msk.bf16.mxu1 %vm3236_vm0, %v3235_v0  ;;  %2861 = vmatprep.mubr.msk.bf16.mxu0 %vm3236_vm0, %v3235_v0 }
 0x1f3   :  { %2865 = vmatprep.subr.bf16.mxu1 %v3235_v0  ;;  %2871 = vmatprep.subr.bf16.mxu0 %v3235_v0 }
 0x22d   :  { %v218_v55 = vpop.f32.mrf.mxu1 }
 0x22e   :  { %v567_v56 = vsel %vm177_vm2, %v218_v55, -inf }
 0x22f   :  { %v2809_v57 = vpop.f32.mrf.mxu1  ;;  %568 = vmax.xlane.f32.xlu1 %v567_v56 }
 0x231   :  { %v221_v58 = vpop.f32.mrf.mxu1  ;;  %v267_v59 = vpop.f32.mrf.mxu0 }
 0x232   :  { %v570_v60 = vsel %vm177_vm2, %v267_v59, -inf }
 0x233   :  { %v2810_v61 = vpop.f32.mrf.mxu1  ;;  %571 = vmax.xlane.f32.xlu0 %v570_v60  ;;  %v2815_v62 = vpop.f32.mrf.mxu0 }
 0x235   :  { %v270_v63 = vpop.f32.mrf.mxu0 }
 0x237   :  { %v2816_v1 = vpop.f32.mrf.mxu0 }
 0x2a0   :  { %v316_v2 = vpop.f32.mrf.mxu1  ;;  %v365_v3 = vpop.f32.mrf.mxu0 }
 0x2a1   :  { %v573_v4 = vsel %vm177_vm2, %v316_v2, -inf  ;;  %v576_v5 = vsel %vm177_vm2, %v365_v3, -inf }
 0x2a2   :  { %v2821_v6 = vpop.f32.mrf.mxu1  ;;  %574 = vmax.xlane.f32.xlu0 %v573_v4  ;;  %577 = vmax.xlane.f32.xlu1 %v576_v5  ;;  %v2827_v9 = vpop.f32.mrf.mxu0 }
 0x2a4   :  { %v319_v10 = vpop.f32.mrf.mxu1  ;;  %v368_v11 = vpop.f32.mrf.mxu0 }
 0x2a6   :  { %v2822_v12 = vpop.f32.mrf.mxu1  ;;  %v2828_v13 = vpop.f32.mrf.mxu0 }
 0x2a8   :  { %v3429_v14 = vpop.f32.mrf.mxu1  ;;  %v463_v15 = vpop.f32.mrf.mxu0 }
 0x2a9   :  { %v579_v16 = vsel %vm177_vm2, %v3429_v14, -inf  ;;  %v582_v17 = vsel %vm177_vm2, %v463_v15, -inf }
 0x2aa   :  { %v2833_v18 = vpop.f32.mrf.mxu1  ;;  %580 = vmax.xlane.f32.xlu0 %v579_v16  ;;  %583 = vmax.xlane.f32.xlu1 %v582_v17  ;;  %v2839_v19 = vpop.f32.mrf.mxu0 }
 0x2ac   :  { %v417_v20 = vpop.f32.mrf.mxu1  ;;  %v466_v21 = vpop.f32.mrf.mxu0 }
 0x2ae   :  { %v2834_v22 = vpop.f32.mrf.mxu1  ;;  %v2840_v23 = vpop.f32.mrf.mxu0 }
 0x2b0   :  { %v3434_v26 = vpop.f32.mrf.mxu1  ;;  %v561_v27 = vpop.f32.mrf.mxu0 }
 0x2b1   :  { %v585_v28 = vsel %vm177_vm2, %v3434_v26, -inf  ;;  %v588_v29 = vsel %vm177_vm2, %v561_v27, -inf }
 0x2b2   :  { %v2845_v30 = vpop.f32.mrf.mxu1  ;;  %586 = vmax.xlane.f32.xlu0 %v585_v28  ;;  %589 = vmax.xlane.f32.xlu1 %v588_v29  ;;  %v2851_v31 = vpop.f32.mrf.mxu0 }
 0x2b4   :  { %v515_v34 = vpop.f32.mrf.mxu1  ;;  %v564_v35 = vpop.f32.mrf.mxu0 }
 0x2b6   :  { %v2846_v36 = vpop.f32.mrf.mxu1  ;;  %v2852_v39 = vpop.f32.mrf.mxu0 }
 0x2b8   :  { %v569_v40 = vpop.xlane.xlu1 %568 }
 0x2b9   :  { %v591_v42 = vsub.f32 %v218_v55, %v569_v40 }
 0x2bb   :  { %v599_v44 = vmul.f32 1.442695, %v591_v42 }
 0x2bc   :  { %v572_v41 = vpop.xlane.xlu0 %571 }
 0x2bd   :  { %v592_v43 = vsub.f32 %v267_v59, %v572_v41  ;;  %3107 = vpow2.f32 %v599_v44 }
 0x2bf   :  { %v601_v45 = vmul.f32 1.442695, %v592_v43 }
 0x2c1   :  { %3109 = vpow2.f32 %v601_v45 }
 0x2c3   :  { %760 = vrot.lane.b32.xlu1 %v3351_v25, %s3232_s16 }
 0x2c8   :  { %808 = vrot.lane.b32.xlu0 %v3349_v24, %s3232_s16 }
 0x2ca   :  { %v3108_v46 = vpop.eup %3107 }
 0x2cb   :  { %v615_v48 = vsel %vm177_vm2, %v3108_v46, 0.0 }
 0x2ce   :  { %v3110_v47 = vpop.eup %3109 }
 0x2cf   :  { %v618_v49 = vsel %vm177_vm2, %v3110_v47, 0.0 }
 0x2e7   :  { %616 = vadd.xlane.f32.xlu0 %v615_v48  ;;  %619 = vadd.xlane.f32.xlu1 %v618_v49 }
 0x2f8   :  { %856 = vrot.lane.b32.xlu1 %v3360_v33, %s3232_s16 }
 0x32b   :  { %v575_v24 = vpop.xlane.xlu0 %574  ;;  %v578_v25 = vpop.xlane.xlu1 %577 }
 0x32c   :  { %v593_v50 = vsub.f32 %v316_v2, %v575_v24  ;;  %v594_v51 = vsub.f32 %v365_v3, %v578_v25 }
 0x32e   :  { %v603_v52 = vmul.f32 1.442695, %v593_v50  ;;  %v605_v53 = vmul.f32 1.442695, %v594_v51 }
 0x330   :  { %3111 = vpow2.f32 %v603_v52 }
 0x331   :  { %3113 = vpow2.f32 %v605_v53 }
 0x333   :  { %v584_v54 = vpop.xlane.xlu1 %583  ;;  %v581_v4 = vpop.xlane.xlu0 %580 }
 0x334   :  { %v596_v55 = vsub.f32 %v463_v15, %v584_v54  ;;  %v595_v5 = vsub.f32 %v3429_v14, %v581_v4 }
 0x336   :  { %v609_v56 = vmul.f32 1.442695, %v596_v55  ;;  %v607_v9 = vmul.f32 1.442695, %v595_v5 }
 0x338   :  { %3115 = vpow2.f32 %v609_v56 }
 0x33b   :  { %v590_v57 = vpop.xlane.xlu1 %589  ;;  %v587_v6 = vpop.xlane.xlu0 %586 }
 0x33c   :  { %v598_v58 = vsub.f32 %v561_v27, %v590_v57  ;;  %v597_v10 = vsub.f32 %v3434_v26, %v587_v6 }
 0x33d   :  { %v3112_v59 = vpop.eup %3111 }
 0x33e   :  { %v3114_v60 = vpop.eup %3113  ;;  %v613_v61 = vmul.f32 1.442695, %v598_v58  ;;  %v621_v62 = vsel %vm177_vm2, %v3112_v59, 0.0  ;;  %v611_v11 = vmul.f32 1.442695, %v597_v10 }
 0x33f   :  { %622 = vadd.xlane.f32.xlu0 %v621_v62  ;;  %v624_v33 = vsel %vm177_vm2, %v3114_v60, 0.0  ;;  %v809_v12 = vpop.permute.xlu0 %808  ;;  %v761_v13 = vpop.permute.xlu1 %760 }
 0x340   :  { %625 = vadd.xlane.f32.xlu1 %v624_v33  ;;  %3117 = vpow2.f32 %v613_v61  ;;  %v766_v26 = vsel %vm668_vm3, %v761_v13, 0  ;;  %v814_v27 = vsel %vm668_vm3, %v809_v12, 0  ;;  %v76_v33 = vld [vmem:[#allocation2 + $0x4] sm:$0xf]  ;;  %v77_v12 = vld [vmem:[#allocation2 + $0x8] sm:$0xf] }
 0x341   :  { %3119 = vpow2.f32 %v607_v9  ;;  %v1150_v13 = vsel %vm668_vm3, %v77_v12, 0 }
 0x342   :  { %3121 = vpow2.f32 %v611_v11 }
 0x345   :  { %v3449_v63 = vpop.eup %3115 }
 0x346   :  { %v630_v1 = vsel %vm177_vm2, %v3449_v63, 0.0 }
 0x347   :  { %631 = vadd.xlane.f32.xlu1 %v630_v1 }
 0x34d   :  { %v3453_v2 = vpop.eup %3117 }
 0x34e   :  { %v636_v3 = vsel %vm177_vm2, %v3453_v2, 0.0  ;;  %v3463_v15 = vpop.eup %3119 }
 0x34f   :  { %637 = vadd.xlane.f32.xlu1 %v636_v3  ;;  %v3467_v14 = vpop.eup %3121 }
 0x355   :  { %904 = vrot.lane.b32.xlu0 %v3358_v32, %s3232_s16  ;;  %v627_v32 = vsel %vm177_vm2, %v3463_v15, 0.0 }
 0x360   :  { %952 = vrot.lane.b32.xlu1 %v3368_v37, %s3232_s16  ;;  %v633_v37 = vsel %vm177_vm2, %v3467_v14, 0.0 }
 0x370   :  { %v617_v16 = vpop.xlane.xlu0 %616  ;;  %v620_v17 = vpop.xlane.xlu1 %619 }
 0x371   :  { %3123 = vrcp.f32 %v617_v16 }
 0x372   :  { %3125 = vrcp.f32 %v620_v17 }
 0x374   :  { %628 = vadd.xlane.f32.xlu0 %v627_v32  ;;  %v857_v28 = vpop.permute.xlu1 %856 }
 0x375   :  { %v862_v43 = vsel %vm668_vm3, %v857_v28, 0 }
 0x378   :  { %634 = vadd.xlane.f32.xlu0 %v633_v37 }
 0x37e   :  { %v3124_v18 = vpop.eup %3123 }
 0x37f   :  { %v3126_v19 = vpop.eup %3125  ;;  %v640_v20 = vmul.f32 %v3124_v18, %v3108_v46 }
 0x380   :  { %v642_v21 = vmul.f32 %v3126_v19, %v3110_v47 }
 0x381   :  { %v655_v22 = vpack.c.bf16 %v640_v20, %v640_v20 }
 0x382   :  { %v656_v23 = vpack.c.bf16 %v642_v21, %v642_v21 }
 0x383   :  { %2856 = vmatmul.mubr.msk.bf16.vlgmr.msra.gmra.mxu1 %vm177_vm2, %v655_v22 }
 0x384   :  { %2862 = vmatmul.mubr.msk.bf16.vlgmr.msra.gmra.mxu0 %vm177_vm2, %v656_v23  ;;  %2866 = vmatpush3.bf16.msra.mxu1 %v766_v26 }
 0x385   :  { %2872 = vmatpush3.bf16.msra.mxu0 %v814_v27  ;;  %2867 = vmatprep.mubr.msk.bf16.mxu1 %vm3236_vm0, %v3235_v0 }
 0x386   :  { %2873 = vmatprep.mubr.msk.bf16.mxu0 %vm3236_vm0, %v3235_v0  ;;  %2877 = vmatprep.subr.bf16.mxu1 %v3235_v0 }
 0x387   :  { %2883 = vmatprep.subr.bf16.mxu0 %v3235_v0 }
 0x38e   :  { %1000 = vrot.lane.b32.xlu0 %v3371_v38, %s3232_s16 }
 0x3c8   :  { %v623_v29 = vpop.xlane.xlu0 %622 }
 0x3c9   :  { %3127 = vrcp.f32 %v623_v29  ;;  %v626_v30 = vpop.xlane.xlu1 %625 }
 0x3ca   :  { %3129 = vrcp.f32 %v626_v30 }
 0x3cc   :  { %v905_v40 = vpop.permute.xlu0 %904 }
 0x3cd   :  { %v910_v38 = vsel %vm668_vm3, %v905_v40, 0 }
 0x3d0   :  { %v632_v31 = vpop.xlane.xlu1 %631 }
 0x3d1   :  { %3131 = vrcp.f32 %v632_v31 }
 0x3d6   :  { %v3128_v34 = vpop.eup %3127 }
 0x3d7   :  { %v3130_v35 = vpop.eup %3129  ;;  %v644_v36 = vmul.f32 %v3128_v34, %v3112_v59 }
 0x3d8   :  { %v646_v39 = vmul.f32 %v3130_v35, %v3114_v60  ;;  %v638_v47 = vpop.xlane.xlu1 %637  ;;  %v75_v60 = vld [vmem:[#allocation2] sm:$0xf] }
 0x3d9   :  { %v657_v41 = vpack.c.bf16 %v644_v36, %v644_v36  ;;  %3133 = vrcp.f32 %v638_v47  ;;  %v1056_v62 = vsel %vm668_vm3, %v75_v60, 0 }
 0x3da   :  { %v658_v42 = vpack.c.bf16 %v646_v39, %v646_v39 }
 0x3db   :  { %2868 = vmatmul.mubr.msk.bf16.vlgmr.msra.gmra.mxu1 %vm177_vm2, %v657_v41 }
 0x3dc   :  { %2874 = vmatmul.mubr.msk.bf16.vlgmr.msra.gmra.mxu0 %vm177_vm2, %v658_v42  ;;  %2878 = vmatpush3.bf16.msra.mxu1 %v862_v43  ;;  %v953_v55 = vpop.permute.xlu1 %952 }
 0x3dd   :  { %2884 = vmatpush3.bf16.msra.mxu0 %v910_v38  ;;  %2885 = vmatprep.mubr.msk.bf16.mxu0 %vm3236_vm0, %v3235_v0  ;;  %v958_v58 = vsel %vm668_vm3, %v953_v55, 0 }
 0x3de   :  { %2895 = vmatprep.subr.bf16.mxu0 %v3235_v0  ;;  %2879 = vmatprep.mubr.msk.bf16.mxu1 %vm3236_vm0, %v3235_v0  ;;  %v3132_v44 = vpop.eup %3131 }
 0x3df   :  { %2889 = vmatprep.subr.bf16.mxu1 %v3235_v0  ;;  %v650_v45 = vmul.f32 %v3132_v44, %v3449_v63  ;;  %v1103_v63 = vsel %vm668_vm3, %v76_v33, 0 }
 0x3e1   :  { %v660_v46 = vpack.c.bf16 %v650_v45, %v650_v45 }
 0x3e4   :  { %2886 = vmatmul.mubr.msk.bf16.vlgmr.msra.gmra.mxu0 %vm177_vm2, %v660_v46 }
 0x3e5   :  { %2897 = vmatprep.mubr.msk.bf16.mxu0 %vm3236_vm0, %v3235_v0 }
 0x3e6   :  { %v3134_v49 = vpop.eup %3133 }
 0x3e7   :  { %v654_v25 = vmul.f32 %v3134_v49, %v3453_v2 }
 0x3e9   :  { %v662_v52 = vpack.c.bf16 %v654_v25, %v654_v25 }
 0x3fd   :  { %v629_v48 = vpop.xlane.xlu0 %628 }
 0x3fe   :  { %3135 = vrcp.f32 %v629_v48 }
 0x401   :  { %v635_v24 = vpop.xlane.xlu0 %634 }
 0x402   :  { %3137 = vrcp.f32 %v635_v24 }
 0x405   :  { %v1001_v50 = vpop.permute.xlu0 %1000 }
 0x406   :  { %v1006_v51 = vsel %vm668_vm3, %v1001_v50, 0 }
 0x407   :  { %2896 = vmatpush3.bf16.msra.mxu0 %v1006_v51 }
 0x408   :  { %2907 = vmatprep.subr.bf16.mxu0 %v3235_v0 }
 0x40a   :  { %2898 = vmatmul.mubr.msk.bf16.vlgmr.msra.gmra.mxu0 %vm177_vm2, %v662_v52 }
 0x40b   :  { %v3136_v53 = vpop.eup %3135  ;;  %2909 = vmatprep.mubr.msk.bf16.mxu0 %vm3236_vm0, %v3235_v0  ;;  %2908 = vmatpush3.bf16.msra.mxu0 %v1103_v63 }
 0x40c   :  { %v648_v54 = vmul.f32 %v3136_v53, %v3463_v15  ;;  %2919 = vmatprep.subr.bf16.mxu0 %v3235_v0  ;;  %v78_v15 = vld [vmem:[#allocation2 + $0xc] sm:$0xf] }
 0x40d   :  { %v1197_v37 = vsel %vm668_vm3, %v78_v15, 0 }
 0x40e   :  { %v659_v56 = vpack.c.bf16 %v648_v54, %v648_v54 }
 0x40f   :  { %v3138_v57 = vpop.eup %3137 }
 0x410   :  { %2880 = vmatmul.mubr.msk.bf16.vlgmr.msra.gmra.mxu1 %vm177_vm2, %v659_v56  ;;  %v652_v59 = vmul.f32 %v3138_v57, %v3467_v14 }
 0x411   :  { %2890 = vmatpush3.bf16.msra.mxu1 %v958_v58  ;;  %2891 = vmatprep.mubr.msk.bf16.mxu1 %vm3236_vm0, %v3235_v0 }
 0x412   :  { %2901 = vmatprep.subr.bf16.mxu1 %v3235_v0  ;;  %v661_v61 = vpack.c.bf16 %v652_v59, %v652_v59 }
 0x418   :  { %2892 = vmatmul.mubr.msk.bf16.vlgmr.msra.gmra.mxu1 %vm177_vm2, %v661_v61 }
 0x419   :  { %2902 = vmatpush3.bf16.msra.mxu1 %v1056_v62  ;;  %2903 = vmatprep.mubr.msk.bf16.mxu1 %vm3236_vm0, %v3235_v0 }
 0x41a   :  { %2913 = vmatprep.subr.bf16.mxu1 %v3235_v0 }
 0x443   :  { %v706_v1 = vpop.f32.mrf.mxu1 }
 0x444   :  { %v754_v2 = vpop.f32.mrf.mxu0 }
 0x445   :  { %v1048_v3 = vpack.c.bf16 %v754_v2, %v706_v1  ;;  %v2857_v4 = vpop.f32.mrf.mxu1  ;;  %v2666_v1 = vld [vmem:[%s3818_s5] ss:$0 sm:$0xff] }
 0x446   :  { %v2863_v5 = vpop.f32.mrf.mxu0 }
 0x447   :  { %2904 = vmatmul.mubr.msk.bf16.vlgmr.msra.gmra.mxu1 %vm177_vm2, %v1048_v3  ;;  %v709_v6 = vpop.f32.mrf.mxu1 }
 0x448   :  { %v757_v9 = vpop.f32.mrf.mxu0  ;;  %2915 = vmatprep.mubr.msk.bf16.mxu1 %vm3236_vm0, %v3235_v0  ;;  %2914 = vmatpush3.bf16.msra.mxu1 %v1150_v13 }
 0x449   :  { %v2858_v10 = vpop.f32.mrf.mxu1  ;;  %2925 = vmatprep.subr.bf16.mxu1 %v3235_v0 }
 0x44a   :  { %v2864_v11 = vpop.f32.mrf.mxu0 }
 0x49b   :  { %v802_v16 = vpop.f32.mrf.mxu1 }
 0x49c   :  { %v850_v17 = vpop.f32.mrf.mxu0 }
 0x49d   :  { %v1049_v32 = vpack.c.bf16 %v850_v17, %v802_v16  ;;  %v2869_v14 = vpop.f32.mrf.mxu1 }
 0x49e   :  { %v2875_v18 = vpop.f32.mrf.mxu0 }
 0x49f   :  { %2910 = vmatmul.mubr.msk.bf16.vlgmr.msra.gmra.mxu0 %vm177_vm2, %v1049_v32  ;;  %v805_v19 = vpop.f32.mrf.mxu1 }
 0x4a0   :  { %v853_v20 = vpop.f32.mrf.mxu0  ;;  %2920 = vmatpush3.bf16.msra.mxu0 %v1197_v37  ;;  %2921 = vmatprep.mubr.msk.bf16.mxu0 %vm3236_vm0, %v3235_v0 }
 0x4a1   :  { %v2870_v21 = vpop.f32.mrf.mxu1  ;;  %2933 = vmatprep.subr.bf16.mxu0 %v3235_v0 }
 0x4a2   :  { %v2876_v22 = vpop.f32.mrf.mxu0 }
 0x4a4   :  { %v946_v23 = vpop.f32.mrf.mxu0 }
 0x4a6   :  { %v2887_v26 = vpop.f32.mrf.mxu0 }
 0x4a8   :  { %v949_v27 = vpop.f32.mrf.mxu0 }
 0x4aa   :  { %v2888_v28 = vpop.f32.mrf.mxu0 }
 0x4ab   :  { %v3104_v28 = vld [vmem:[%s3815_s2 + $0x10] sm:$0xff]  }
 0x4ca   :  { %v1042_v29 = vpop.f32.mrf.mxu0 }
 0x4cc   :  { %v2899_v30 = vpop.f32.mrf.mxu0 }
 0x4ce   :  { %v1045_v31 = vpop.f32.mrf.mxu0 }
 0x4d0   :  { %v898_v34 = vpop.f32.mrf.mxu1  ;;  %v2900_v35 = vpop.f32.mrf.mxu0 }
 0x4d1   :  { %v1050_v36 = vpack.c.bf16 %v946_v23, %v898_v34 }
 0x4d2   :  { %v2881_v39 = vpop.f32.mrf.mxu1 }
 0x4d3   :  { %2916 = vmatmul.mubr.msk.bf16.vlgmr.msra.gmra.mxu1 %vm177_vm2, %v1050_v36 }
 0x4d4   :  { %v901_v40 = vpop.f32.mrf.mxu1  ;;  %2929 = vmatprep.mubr.msk.bf16.mxu1 %vm3236_vm0, %v3235_v0 }
 0x4d5   :  { %v2667_v40 = vld [vmem:[%s3819_s6] ss:$0 sm:$0xff] }
 0x4d6   :  { %v2882_v41 = vpop.f32.mrf.mxu1 }
 0x4d8   :  { %v994_v42 = vpop.f32.mrf.mxu1 }
 0x4d9   :  { %v1051_v43 = vpack.c.bf16 %v1042_v29, %v994_v42  ;;  %v2668_v42 = vld [vmem:[%s3820_s7] ss:$0 sm:$0xff] }
 0x4da   :  { %v2893_v38 = vpop.f32.mrf.mxu1 }
 0x4db   :  { %2922 = vmatmul.mubr.msk.bf16.vlgmr.msra.gmra.mxu0 %vm177_vm2, %v1051_v43 }
 0x4dc   :  { %v997_v44 = vpop.f32.mrf.mxu1  ;;  %2935 = vmatprep.mubr.msk.bf16.mxu0 %vm3236_vm0, %v3235_v0 }
 0x4de   :  { %v2894_v45 = vpop.f32.mrf.mxu1 }
 0x507   :  { %v1092_v46 = vpop.f32.mrf.mxu1 }
 0x508   :  { %v1240_v56 = vsel %vm101_vm1, %v1092_v46, 0.0 }
 0x509   :  { %v2905_v47 = vpop.f32.mrf.mxu1 }
 0x50b   :  { %v1095_v48 = vpop.f32.mrf.mxu1 }
 0x50c   :  { %v1247_v33 = vsel %vm101_vm1, %v1095_v48, 0.0 }
 0x50d   :  { %v2906_v49 = vpop.f32.mrf.mxu1 }
 0x55f   :  { %v1139_v24 = vpop.f32.mrf.mxu0 }
 0x560   :  { %v1241_v54 = vsel %vm101_vm1, %v1139_v24, 0.0 }
 0x561   :  { %v2911_v25 = vpop.f32.mrf.mxu0  ;;  %v1242_v58 = vadd.f32 %v1241_v54, %v1240_v56 }
 0x563   :  { %v1142_v50 = vpop.f32.mrf.mxu0 }
 0x564   :  { %v1248_v60 = vsel %vm101_vm1, %v1142_v50, 0.0 }
 0x565   :  { %v2912_v51 = vpop.f32.mrf.mxu0  ;;  %v1249_v3 = vadd.f32 %v1248_v60, %v1247_v33 }
 0x593   :  { %v1186_v52 = vpop.f32.mrf.mxu1 }
 0x594   :  { %v1243_v57 = vsel %vm101_vm1, %v1186_v52, 0.0 }
 0x595   :  { %v2917_v53 = vpop.f32.mrf.mxu1  ;;  %v1244_v61 = vadd.f32 %v1243_v57, %v1242_v58  ;;  %v2677_v58 = vld [vmem:[%s3816_s3 + $0x1] ss:$0 sm:$0xff] }
 0x597   :  { %v1189_v55 = vpop.f32.mrf.mxu1 }
 0x598   :  { %v1250_v63 = vsel %vm101_vm1, %v1189_v55, 0.0 }
 0x599   :  { %v2918_v59 = vpop.f32.mrf.mxu1  ;;  %v1251_v6 = vadd.f32 %v1250_v63, %v1249_v3 }
 0x59b   :  { %v1233_v62 = vpop.f32.mrf.mxu0 }
 0x59c   :  { %v1245_v2 = vsel %vm101_vm1, %v1233_v62, 0.0 }
 0x59d   :  { %v1246_v4 = vadd.f32 %v1245_v2, %v1244_v61  ;;  %v2923_v5 = vpop.f32.mrf.mxu0 }
 0x59f   :  { %v1260_v9 = vadd.f32 %v2666_v1, %v1246_v4  ;;  %v1236_v10 = vpop.f32.mrf.mxu0 }
 0x5a0   :  { %v1252_v11 = vsel %vm101_vm1, %v1236_v10, 0.0 }
 0x5a1   :  { %v1253_v12 = vadd.f32 %v1252_v11, %v1251_v6  ;;  %v2924_v13 = vpop.f32.mrf.mxu0  ;;  %v1262_v15 = vadd.f32 %v1260_v9, %v3331_v7 }
 0x5a3   :  { %v1261_v16 = vadd.f32 %v2666_v1, %v1253_v12  ;;  %v1264_v17 = vsel %vm101_vm1, %v1262_v15, 0.0 }
 0x5a4   :  { %1265 = vadd.xlane.f32.xlu1 %v1264_v17 }
 0x5a5   :  { %v1263_v32 = vadd.f32 %v1261_v16, %v3333_v8  ;;  %v3103_v8 = vld [vmem:[%s3815_s2 + $0x18] sm:$0xff]  }
 0x5a6   :  { %2926 = vmatpush3.bf16.msra.mxu1 %v3103_v8 }
 0x5a7   :  { %v1267_v14 = vsel %vm101_vm1, %v1263_v32, 0.0  ;;  %2927 = vmatprep.subr.bf16.mxu1 %v3235_v0 }
 0x5a8   :  { %1268 = vadd.xlane.f32.xlu0 %v1267_v14 }
 0x5aa   :  { %2928 = vmatpush3.bf16.msra.mxu1 %v3104_v28 }
 0x5ab   :  { %2939 = vmatprep.subr.bf16.mxu1 %v3235_v0 }
 0x62d   :  { %v1266_v37 = vpop.xlane.xlu1 %1265 }
 0x62e   :  { %v1271_v18 = vmul.f32 0.03125, %v1266_v37 }
 0x630   :  { %v1273_v19 = vsub.f32 %v1262_v15, %v1271_v18 }
 0x631   :  { %v1269_v20 = vpop.xlane.xlu0 %1268 }
 0x632   :  { %v1272_v21 = vmul.f32 0.03125, %v1269_v20  ;;  %v1275_v22 = vmul.f32 %v1273_v19, %v1273_v19 }
 0x634   :  { %v1274_v23 = vsub.f32 %v1263_v32, %v1272_v21  ;;  %v1277_v26 = vsel %vm101_vm1, %v1275_v22, 0.0 }
 0x635   :  { %1278 = vadd.xlane.f32.xlu0 %v1277_v26 }
 0x636   :  { %v1276_v7 = vmul.f32 %v1274_v23, %v1274_v23 }
 0x638   :  { %v1280_v27 = vsel %vm101_vm1, %v1276_v7, 0.0 }
 0x639   :  { %1281 = vadd.xlane.f32.xlu1 %v1280_v27 }
 0x6be   :  { %v1279_v29 = vpop.xlane.xlu0 %1278 }
 0x6bf   :  { %v1283_v30 = vmul.f32 0.03125, %v1279_v29 }
 0x6c1   :  { %v1285_v31 = vadd.f32 1e-05, %v1283_v30 }
 0x6c2   :  { %v1282_v34 = vpop.xlane.xlu1 %1281 }
 0x6c3   :  { %3139 = vrsqrt.f32 %v1285_v31  ;;  %v1284_v35 = vmul.f32 0.03125, %v1282_v34 }
 0x6c5   :  { %v1286_v36 = vadd.f32 1e-05, %v1284_v35 }
 0x6c7   :  { %3141 = vrsqrt.f32 %v1286_v36 }
 0x6d0   :  { %v3140_v39 = vpop.eup %3139 }
 0x6d1   :  { %v1289_v41 = vmul.f32 %v3140_v39, %v1273_v19 }
 0x6d3   :  { %v1297_v43 = vmul.f32 %v2667_v40, %v1289_v41 }
 0x6d4   :  { %v3142_v38 = vpop.eup %3141 }
 0x6d5   :  { %v1290_v44 = vmul.f32 %v3142_v38, %v1274_v23  ;;  %v1305_v45 = vadd.f32 %v2668_v42, %v1297_v43 }
 0x6d7   :  { %v1298_v46 = vmul.f32 %v2667_v40, %v1290_v44  ;;  %v1309_v47 = vmul.f32 0.70710677, %v1305_v45  ;;  %v1307_v51 = vmul.f32 0.5, %v1305_v45 }
 0x6d9   :  { %v1306_v48 = vadd.f32 %v2668_v42, %v1298_v46  ;;  %3143 = verf.f32 %v1309_v47 }
 0x6db   :  { %v1310_v49 = vmul.f32 0.70710677, %v1306_v48  ;;  %v1308_v52 = vmul.f32 0.5, %v1306_v48 }
 0x6dd   :  { %3145 = verf.f32 %v1310_v49 }
 0x6e6   :  { %v3144_v24 = vpop.eup %3143 }
 0x6e7   :  { %v1313_v25 = vadd.f32 1.0, %v3144_v24 }
 0x6e9   :  { %v3564_v54 = vmul.f32 %v1313_v25, %v1307_v51 }
 0x6ea   :  { %v3146_v50 = vpop.eup %3145 }
 0x6eb   :  { %v1314_v53 = vadd.f32 1.0, %v3146_v50 }
 0x6ed   :  { %v3566_v55 = vmul.f32 %v1314_v53, %v1308_v52 }
 0x6ef   :  { %v1335_v56 = vpack.c.bf16 %v3566_v55, %v3564_v54 }
 0x6f1   :  { %2930 = vmatmul.mubr.msk.bf16.vlgmr.msra.gmra.mxu1 %vm101_vm1, %v1335_v56 }
 0x6f2   :  { %2941 = vmatprep.mubr.msk.bf16.mxu1 %vm3236_vm0, %v3235_v0 }
 0x7b1   :  { %v1391_v57 = vpop.f32.mrf.mxu1 }
 0x7b2   :  { %v1392_v61 = vadd.f32 %v2677_v58, %v1391_v57 }
 0x7b3   :  { %v2931_v59 = vpop.f32.mrf.mxu1 }
 0x7b4   :  { %v1418_v1 = vpack.c.bf16 %v1392_v61, %v1392_v61 }
 0x7b5   :  { %v1394_v60 = vpop.f32.mrf.mxu1 }
 0x7b6   :  { %v1395_v62 = vadd.f32 %v2677_v58, %v1394_v60 }
 0x7b7   :  { %v2932_v33 = vpop.f32.mrf.mxu1 }
 0x7b8   :  { %v3091_v63 = vpack.i.bf16 %v1395_v62, %v1392_v61  ;;  %v3580_v2 = vpack.c.bf16 %v1395_v62, %v1395_v62 }
 0x7ba   :  { %3092 = vrot.lane.b32.xlu1 %v3091_v63, %s3240_s19  ;;  %3087 = vrot.lane.b32.xlu0 %v3091_v63, %s3238_s17 }
 0x7be   :  { %3097 = vrot.lane.b32.xlu1 %v3091_v63, %s3237_s1  ;;  %1427 = vrot.lane.b32.xlu0 %v1418_v1, %s3239_s18 }
 0x7c2   :  { %1476 = vrot.lane.b32.xlu1 %v3580_v2, %s3239_s18 }
 0x82c   :  { %v3093_v3 = vpop.permute.xlu1 %3092  ;;  %v3088_v4 = vpop.permute.xlu0 %3087 }
 0x82d   :  { %v3090_v5 = vunpack.i.h.bf16 %v3088_v4  ;;  %v3089_v6 = vunpack.i.l.bf16 %v3088_v4  ;;  %v3095_v9 = vunpack.i.h.bf16 %v3093_v3  ;;  %v3094_v10 = vunpack.i.l.bf16 %v3093_v3 }
 0x82f   :  { %v3584_v11 = vpack.c.bf16 %v3090_v5, %v3090_v5  ;;  %v3586_v12 = vpack.c.bf16 %v3089_v6, %v3089_v6  ;;  %v3593_v17 = vpack.c.bf16 %v3095_v9, %v3095_v9  ;;  %v3595_v32 = vpack.c.bf16 %v3094_v10, %v3094_v10 }
 0x830   :  { %v3098_v13 = vpop.permute.xlu1 %3097  ;;  %v1428_v15 = vpop.permute.xlu0 %1427 }
 0x831   :  { %v1433_v16 = vsel %vm177_vm2, %v1428_v15, 0  ;;  %1525 = vrot.lane.b32.xlu0 %v3586_v12, %s3239_s18  ;;  %1574 = vrot.lane.b32.xlu1 %v3584_v11, %s3239_s18  ;;  %v3099_v14 = vunpack.i.l.bf16 %v3098_v13  ;;  %v3100_v37 = vunpack.i.h.bf16 %v3098_v13 }
 0x832   :  { %2934 = vmatpush3.bf16.xpose.msra.mxu0 %v1433_v16 }
 0x833   :  { %2945 = vmatprep.subr.bf16.mxu0 %v3235_v0  ;;  %v3603_v20 = vpack.c.bf16 %v3099_v14, %v3099_v14  ;;  %v3606_v21 = vpack.c.bf16 %v3100_v37, %v3100_v37 }
 0x834   :  { %v1477_v18 = vpop.permute.xlu1 %1476 }
 0x835   :  { %v1482_v19 = vsel %vm177_vm2, %v1477_v18, 0  ;;  %1623 = vrot.lane.b32.xlu0 %v3595_v32, %s3239_s18  ;;  %1672 = vrot.lane.b32.xlu1 %v3593_v17, %s3239_s18 }
 0x836   :  { %2940 = vmatpush3.bf16.xpose.msra.mxu1 %v1482_v19 }
 0x837   :  { %2951 = vmatprep.subr.bf16.mxu1 %v3235_v0 }
 0x839   :  { %2936 = vmatmul.mubr.msk.bf16.vlgmr.msra.gmra.mxu0 %vm177_vm2, %v1418_v1  ;;  %1721 = vrot.lane.b32.xlu0 %v3603_v20, %s3239_s18 }
 0x83a   :  { %1770 = vrot.lane.b32.xlu1 %v3606_v21, %s3239_s18  ;;  %2947 = vmatprep.mubr.msk.bf16.mxu0 %vm3236_vm0, %v3235_v0 }
 0x83d   :  { %2942 = vmatmul.mubr.msk.bf16.vlgmr.msra.gmra.mxu1 %vm177_vm2, %v3580_v2 }
 0x83e   :  { %1914 = vrot.lane.b32.xlu1 %v1418_v1, %s3232_s16  ;;  %2953 = vmatprep.mubr.msk.bf16.mxu1 %vm3236_vm0, %v3235_v0 }
 0x8a3   :  { %v1526_v22 = vpop.permute.xlu0 %1525  ;;  %v1575_v23 = vpop.permute.xlu1 %1574 }
 0x8a4   :  { %v1531_v26 = vsel %vm177_vm2, %v1526_v22, 0  ;;  %v1580_v7 = vsel %vm177_vm2, %v1575_v23, 0 }
 0x8a5   :  { %2946 = vmatpush3.bf16.xpose.msra.mxu0 %v1531_v26  ;;  %2952 = vmatpush3.bf16.xpose.msra.mxu1 %v1580_v7 }
 0x8a6   :  { %2957 = vmatprep.subr.bf16.mxu0 %v3235_v0  ;;  %2963 = vmatprep.subr.bf16.mxu1 %v3235_v0 }
 0x8a7   :  { %v1624_v27 = vpop.permute.xlu0 %1623  ;;  %v1673_v8 = vpop.permute.xlu1 %1672 }
 0x8a8   :  { %v1629_v28 = vsel %vm177_vm2, %v1624_v27, 0  ;;  %v1678_v29 = vsel %vm177_vm2, %v1673_v8, 0 }
 0x8ab   :  { %v1722_v30 = vpop.permute.xlu0 %1721 }
 0x8ac   :  { %2948 = vmatmul.mubr.msk.bf16.vlgmr.msra.gmra.mxu0 %vm177_vm2, %v3586_v12  ;;  %2954 = vmatmul.mubr.msk.bf16.vlgmr.msra.gmra.mxu1 %vm177_vm2, %v3584_v11  ;;  %v1771_v31 = vpop.permute.xlu1 %1770  ;;  %v1727_v34 = vsel %vm177_vm2, %v1722_v30, 0 }
 0x8ad   :  { %2958 = vmatpush3.bf16.xpose.msra.mxu0 %v1629_v28  ;;  %2964 = vmatpush3.bf16.xpose.msra.mxu1 %v1678_v29  ;;  %v1776_v35 = vsel %vm177_vm2, %v1771_v31, 0 }
 0x8ae   :  { %2959 = vmatprep.mubr.msk.bf16.mxu0 %vm3236_vm0, %v3235_v0  ;;  %2965 = vmatprep.mubr.msk.bf16.mxu1 %vm3236_vm0, %v3235_v0 }
 0x8af   :  { %2969 = vmatprep.subr.bf16.mxu0 %v3235_v0  ;;  %2975 = vmatprep.subr.bf16.mxu1 %v3235_v0 }
 0x8b0   :  { %v1915_v36 = vpop.permute.xlu1 %1914 }
 0x8b1   :  { %v1920_v39 = vsel %vm668_vm3, %v1915_v36, 0 }
 0x8b4   :  { %2960 = vmatmul.mubr.msk.bf16.vlgmr.msra.gmra.mxu0 %vm177_vm2, %v3595_v32  ;;  %2966 = vmatmul.mubr.msk.bf16.vlgmr.msra.gmra.mxu1 %vm177_vm2, %v3593_v17 }
 0x8b5   :  { %2970 = vmatpush3.bf16.xpose.msra.mxu0 %v1727_v34  ;;  %2976 = vmatpush3.bf16.xpose.msra.mxu1 %v1776_v35 }
 0x8b6   :  { %2971 = vmatprep.mubr.msk.bf16.mxu0 %vm3236_vm0, %v3235_v0  ;;  %2977 = vmatprep.mubr.msk.bf16.mxu1 %vm3236_vm0, %v3235_v0 }
 0x8b7   :  { %2981 = vmatprep.subr.bf16.mxu0 %v3235_v0  ;;  %2987 = vmatprep.subr.bf16.mxu1 %v3235_v0 }
 0x8bc   :  { %2972 = vmatmul.mubr.msk.bf16.vlgmr.msra.gmra.mxu0 %vm177_vm2, %v3603_v20  ;;  %2978 = vmatmul.mubr.msk.bf16.vlgmr.msra.gmra.mxu1 %vm177_vm2, %v3606_v21 }
 0x8bd   :  { %2982 = vmatpush3.bf16.msra.mxu0 %v1920_v39  ;;  %2989 = vmatprep.mubr.msk.bf16.mxu1 %vm3236_vm0, %v3235_v0 }
 0x8be   :  { %2983 = vmatprep.mubr.msk.bf16.mxu0 %vm3236_vm0, %v3235_v0  ;;  %2993 = vmatprep.subr.bf16.mxu0 %v3235_v0 }
 0x8f9   :  { %v1469_v40 = vpop.f32.mrf.mxu0 }
 0x8fa   :  { %v1818_v41 = vsel %vm177_vm2, %v1469_v40, -inf }
 0x8fb   :  { %1819 = vmax.xlane.f32.xlu0 %v1818_v41  ;;  %v2937_v42 = vpop.f32.mrf.mxu0 }
 0x8fd   :  { %v1472_v43 = vpop.f32.mrf.mxu0  ;;  %v1518_v38 = vpop.f32.mrf.mxu1 }
 0x8fe   :  { %v1821_v44 = vsel %vm177_vm2, %v1518_v38, -inf }
 0x8ff   :  { %1822 = vmax.xlane.f32.xlu1 %v1821_v44  ;;  %v2938_v45 = vpop.f32.mrf.mxu0  ;;  %v2943_v46 = vpop.f32.mrf.mxu1 }
 0x901   :  { %v1521_v47 = vpop.f32.mrf.mxu1 }
 0x903   :  { %v2944_v48 = vpop.f32.mrf.mxu1 }
 0x96c   :  { %v1567_v49 = vpop.f32.mrf.mxu0  ;;  %v1616_v24 = vpop.f32.mrf.mxu1 }
 0x96d   :  { %v1824_v25 = vsel %vm177_vm2, %v1567_v49, -inf  ;;  %v1827_v56 = vsel %vm177_vm2, %v1616_v24, -inf }
 0x96e   :  { %v2955_v50 = vpop.f32.mrf.mxu1  ;;  %1825 = vmax.xlane.f32.xlu0 %v1824_v25  ;;  %v2949_v51 = vpop.f32.mrf.mxu0 }
 0x970   :  { %v1570_v52 = vpop.f32.mrf.mxu0  ;;  %v1619_v53 = vpop.f32.mrf.mxu1 }
 0x972   :  { %v2956_v57 = vpop.f32.mrf.mxu1  ;;  %1828 = vmax.xlane.f32.xlu0 %v1827_v56  ;;  %v2950_v58 = vpop.f32.mrf.mxu0 }
 0x974   :  { %v3662_v59 = vpop.f32.mrf.mxu0  ;;  %v3664_v60 = vpop.f32.mrf.mxu1 }
 0x975   :  { %v1833_v61 = vsel %vm177_vm2, %v3664_v60, -inf  ;;  %v1830_v62 = vsel %vm177_vm2, %v3662_v59, -inf }
 0x976   :  { %v2967_v33 = vpop.f32.mrf.mxu1  ;;  %1834 = vmax.xlane.f32.xlu0 %v1833_v61  ;;  %1831 = vmax.xlane.f32.xlu1 %v1830_v62  ;;  %v2961_v63 = vpop.f32.mrf.mxu0 }
 0x978   :  { %v1668_v1 = vpop.f32.mrf.mxu0  ;;  %v1717_v3 = vpop.f32.mrf.mxu1 }
 0x97a   :  { %v2962_v4 = vpop.f32.mrf.mxu0  ;;  %v2968_v5 = vpop.f32.mrf.mxu1 }
 0x97c   :  { %v1763_v6 = vpop.f32.mrf.mxu0  ;;  %v1812_v9 = vpop.f32.mrf.mxu1 }
 0x97d   :  { %v1839_v10 = vsel %vm177_vm2, %v1812_v9, -inf  ;;  %v1836_v13 = vsel %vm177_vm2, %v1763_v6, -inf }
 0x97e   :  { %v2979_v15 = vpop.f32.mrf.mxu1  ;;  %1840 = vmax.xlane.f32.xlu0 %v1839_v10  ;;  %1837 = vmax.xlane.f32.xlu1 %v1836_v13  ;;  %v2973_v16 = vpop.f32.mrf.mxu0 }
 0x980   :  { %v1766_v14 = vpop.f32.mrf.mxu0  ;;  %v1815_v37 = vpop.f32.mrf.mxu1 }
 0x982   :  { %v2974_v18 = vpop.f32.mrf.mxu0  ;;  %v2980_v19 = vpop.f32.mrf.mxu1 }
 0x984   :  { %v1820_v26 = vpop.xlane.xlu0 %1819 }
 0x985   :  { %v1842_v7 = vsub.f32 %v1469_v40, %v1820_v26 }
 0x987   :  { %v1850_v8 = vmul.f32 1.442695, %v1842_v7 }
 0x988   :  { %v1823_v22 = vpop.xlane.xlu1 %1822 }
 0x989   :  { %v1843_v23 = vsub.f32 %v1518_v38, %v1823_v22 }
 0x98b   :  { %v1852_v27 = vmul.f32 1.442695, %v1843_v23 }
 0x98d   :  { %3147 = vpow2.f32 %v1852_v27 }
 0x98e   :  { %3149 = vpow2.f32 %v1850_v8 }
 0x98f   :  { %2010 = vrot.lane.b32.xlu1 %v3586_v12, %s3232_s16 }
 0x993   :  { %2058 = vrot.lane.b32.xlu1 %v3584_v11, %s3232_s16 }
 0x994   :  { %1962 = vrot.lane.b32.xlu0 %v3580_v2, %s3232_s16 }
 0x99a   :  { %v3148_v28 = vpop.eup %3147 }
 0x99b   :  { %v1869_v29 = vsel %vm177_vm2, %v3148_v28, 0.0  ;;  %v3679_v30 = vpop.eup %3149 }
 0x99c   :  { %v1866_v11 = vsel %vm177_vm2, %v3679_v30, 0.0 }
 0x9b3   :  { %1870 = vadd.xlane.f32.xlu0 %v1869_v29 }
 0x9b7   :  { %1867 = vadd.xlane.f32.xlu1 %v1866_v11 }
 0x9f7   :  { %v1826_v12 = vpop.xlane.xlu0 %1825 }
 0x9f8   :  { %v1844_v2 = vsub.f32 %v1567_v49, %v1826_v12 }
 0x9fa   :  { %v1854_v31 = vmul.f32 1.442695, %v1844_v2 }
 0x9fb   :  { %v1829_v34 = vpop.xlane.xlu0 %1828 }
 0x9fc   :  { %3151 = vpow2.f32 %v1854_v31  ;;  %v1845_v35 = vsub.f32 %v1616_v24, %v1829_v34 }
 0x9fe   :  { %v1856_v36 = vmul.f32 1.442695, %v1845_v35 }
 0x9ff   :  { %v1835_v39 = vpop.xlane.xlu0 %1834  ;;  %v1832_v46 = vpop.xlane.xlu1 %1831 }
 0xa00   :  { %3153 = vpow2.f32 %v1856_v36  ;;  %v1846_v47 = vsub.f32 %v3662_v59, %v1832_v46  ;;  %v1847_v49 = vsub.f32 %v3664_v60, %v1835_v39 }
 0xa02   :  { %v1858_v24 = vmul.f32 1.442695, %v1846_v47  ;;  %v1860_v50 = vmul.f32 1.442695, %v1847_v49  ;;  %v1326_v49 = vld [vmem:[#allocation2 + $0x14] sm:$0xf] }
 0xa04   :  { %3155 = vpow2.f32 %v1858_v24  ;;  %v2353_v24 = vsel %vm668_vm3, %v1326_v49, 0 }
 0xa05   :  { %3157 = vpow2.f32 %v1860_v50 }
 0xa07   :  { %v1841_v40 = vpop.xlane.xlu0 %1840  ;;  %v1838_v48 = vpop.xlane.xlu1 %1837 }
 0xa08   :  { %v1848_v25 = vsub.f32 %v1763_v6, %v1838_v48  ;;  %v1849_v51 = vsub.f32 %v1812_v9, %v1841_v40 }
 0xa09   :  { %v3683_v41 = vpop.eup %3151 }
 0xa0a   :  { %v1872_v42 = vsel %vm177_vm2, %v3683_v41, 0.0  ;;  %v1862_v52 = vmul.f32 1.442695, %v1848_v25  ;;  %v1864_v53 = vmul.f32 1.442695, %v1849_v51 }
 0xa0b   :  { %v1963_v43 = vpop.permute.xlu0 %1962  ;;  %1873 = vadd.xlane.f32.xlu1 %v1872_v42  ;;  %v2011_v56 = vpop.permute.xlu1 %2010 }
 0xa0c   :  { %v1968_v38 = vsel %vm668_vm3, %v1963_v43, 0  ;;  %3159 = vpow2.f32 %v1862_v52  ;;  %v2016_v15 = vsel %vm668_vm3, %v2011_v56, 0 }
 0xa0d   :  { %v3688_v44 = vpop.eup %3153  ;;  %2988 = vmatpush3.bf16.msra.mxu1 %v1968_v38  ;;  %3161 = vpow2.f32 %v1864_v53  ;;  %v1325_v38 = vld [vmem:[#allocation2 + $0x10] sm:$0xf] }
 0xa0e   :  { %v1875_v45 = vsel %vm177_vm2, %v3688_v44, 0.0  ;;  %2999 = vmatprep.subr.bf16.mxu1 %v3235_v0  ;;  %v2306_v47 = vsel %vm668_vm3, %v1325_v38, 0 }
 0xa0f   :  { %1876 = vadd.xlane.f32.xlu0 %v1875_v45  ;;  %v2059_v57 = vpop.permute.xlu1 %2058 }
 0xa10   :  { %v2064_v9 = vsel %vm668_vm3, %v2059_v57, 0 }
 0xa1c   :  { %2154 = vrot.lane.b32.xlu1 %v3593_v17, %s3232_s16  ;;  %v3699_v17 = vpop.eup %3155 }
 0xa1d   :  { %v3701_v58 = vpop.eup %3157  ;;  %v1878_v59 = vsel %vm177_vm2, %v3699_v17, 0.0 }
 0xa1e   :  { %v3705_v60 = vpop.eup %3159  ;;  %v1881_v62 = vsel %vm177_vm2, %v3701_v58, 0.0 }
 0xa1f   :  { %v1884_v33 = vsel %vm177_vm2, %v3705_v60, 0.0  ;;  %v3711_v63 = vpop.eup %3161 }
 0xa20   :  { %v1887_v1 = vsel %vm177_vm2, %v3711_v63, 0.0 }
 0xa25   :  { %2106 = vrot.lane.b32.xlu0 %v3595_v32, %s3232_s16 }
 0xa3c   :  { %v1871_v32 = vpop.xlane.xlu0 %1870 }
 0xa3d   :  { %3163 = vrcp.f32 %v1871_v32 }
 0xa40   :  { %1879 = vadd.xlane.f32.xlu1 %v1878_v59  ;;  %v1868_v61 = vpop.xlane.xlu1 %1867 }
 0xa41   :  { %3165 = vrcp.f32 %v1868_v61 }
 0xa44   :  { %1882 = vadd.xlane.f32.xlu0 %v1881_v62  ;;  %1885 = vadd.xlane.f32.xlu1 %v1884_v33  ;;  %v1328_v62 = vld [vmem:[#allocation2 + $0x1c] sm:$0xf] }
 0xa48   :  { %1888 = vadd.xlane.f32.xlu0 %v1887_v1 }
 0xa4a   :  { %v3164_v3 = vpop.eup %3163 }
 0xa4b   :  { %v1893_v4 = vmul.f32 %v3164_v3, %v3148_v28  ;;  %v2447_v3 = vsel %vm668_vm3, %v1328_v62, 0 }
 0xa4d   :  { %v1907_v5 = vpack.c.bf16 %v1893_v4, %v1893_v4 }
 0xa4e   :  { %v3166_v6 = vpop.eup %3165 }
 0xa4f   :  { %2990 = vmatmul.mubr.msk.bf16.vlgmr.msra.gmra.mxu1 %vm177_vm2, %v1907_v5  ;;  %v1891_v10 = vmul.f32 %v3166_v6, %v3679_v30 }
 0xa50   :  { %3000 = vmatpush3.bf16.msra.mxu1 %v2064_v9  ;;  %3001 = vmatprep.mubr.msk.bf16.mxu1 %vm3236_vm0, %v3235_v0 }
 0xa51   :  { %v1906_v13 = vpack.c.bf16 %v1891_v10, %v1891_v10  ;;  %3011 = vmatprep.subr.bf16.mxu1 %v3235_v0 }
 0xa53   :  { %2984 = vmatmul.mubr.msk.bf16.vlgmr.msra.gmra.mxu0 %vm177_vm2, %v1906_v13 }
 0xa54   :  { %2994 = vmatpush3.bf16.msra.mxu0 %v2016_v15  ;;  %2995 = vmatprep.mubr.msk.bf16.mxu0 %vm3236_vm0, %v3235_v0 }
 0xa55   :  { %2250 = vrot.lane.b32.xlu1 %v3606_v21, %s3232_s16  ;;  %3005 = vmatprep.subr.bf16.mxu0 %v3235_v0 }
 0xa5e   :  { %2202 = vrot.lane.b32.xlu0 %v3603_v20, %s3232_s16 }
 0xa94   :  { %v1874_v16 = vpop.xlane.xlu1 %1873 }
 0xa95   :  { %3167 = vrcp.f32 %v1874_v16 }
 0xa98   :  { %v1877_v14 = vpop.xlane.xlu0 %1876  ;;  %v2155_v7 = vpop.permute.xlu1 %2154 }
 0xa99   :  { %3169 = vrcp.f32 %v1877_v14  ;;  %v2160_v27 = vsel %vm668_vm3, %v2155_v7, 0 }
 0xa9c   :  { %v2107_v19 = vpop.permute.xlu0 %2106 }
 0xa9d   :  { %v2112_v26 = vsel %vm668_vm3, %v2107_v19, 0 }
 0xaa2   :  { %v3168_v37 = vpop.eup %3167 }
 0xaa3   :  { %v1895_v18 = vmul.f32 %v3168_v37, %v3683_v41 }
 0xaa5   :  { %v1908_v22 = vpack.c.bf16 %v1895_v18, %v1895_v18 }
 0xaa6   :  { %v3170_v23 = vpop.eup %3169 }
 0xaa7   :  { %2996 = vmatmul.mubr.msk.bf16.vlgmr.msra.gmra.mxu0 %vm177_vm2, %v1908_v22  ;;  %v1897_v21 = vmul.f32 %v3170_v23, %v3688_v44 }
 0xaa8   :  { %3006 = vmatpush3.bf16.msra.mxu0 %v2112_v26  ;;  %3007 = vmatprep.mubr.msk.bf16.mxu0 %vm3236_vm0, %v3235_v0 }
 0xaa9   :  { %v1909_v20 = vpack.c.bf16 %v1897_v21, %v1897_v21  ;;  %3017 = vmatprep.subr.bf16.mxu0 %v3235_v0 }
 0xaab   :  { %3002 = vmatmul.mubr.msk.bf16.vlgmr.msra.gmra.mxu1 %vm177_vm2, %v1909_v20 }
 0xaac   :  { %3012 = vmatpush3.bf16.msra.mxu1 %v2160_v27  ;;  %3013 = vmatprep.mubr.msk.bf16.mxu1 %vm3236_vm0, %v3235_v0 }
 0xaad   :  { %3023 = vmatprep.subr.bf16.mxu1 %v3235_v0 }
 0xac9   :  { %v1880_v8 = vpop.xlane.xlu1 %1879 }
 0xaca   :  { %3171 = vrcp.f32 %v1880_v8 }
 0xacd   :  { %v1883_v28 = vpop.xlane.xlu0 %1882  ;;  %v1886_v29 = vpop.xlane.xlu1 %1885 }
 0xace   :  { %3173 = vrcp.f32 %v1883_v28 }
 0xacf   :  { %3175 = vrcp.f32 %v1886_v29 }
 0xad1   :  { %v1889_v30 = vpop.xlane.xlu0 %1888  ;;  %v2251_v40 = vpop.permute.xlu1 %2250 }
 0xad2   :  { %3177 = vrcp.f32 %v1889_v30  ;;  %v2256_v44 = vsel %vm668_vm3, %v2251_v40, 0 }
 0xad5   :  { %v2203_v2 = vpop.permute.xlu0 %2202 }
 0xad6   :  { %v2208_v36 = vsel %vm668_vm3, %v2203_v2, 0 }
 0xad7   :  { %v3172_v11 = vpop.eup %3171 }
 0xad8   :  { %v1899_v12 = vmul.f32 %v3172_v11, %v3699_v17 }
 0xada   :  { %v1910_v31 = vpack.c.bf16 %v1899_v12, %v1899_v12 }
 0xadb   :  { %v3174_v34 = vpop.eup %3173 }
 0xadc   :  { %v3176_v35 = vpop.eup %3175  ;;  %3008 = vmatmul.mubr.msk.bf16.vlgmr.msra.gmra.mxu0 %vm177_vm2, %v1910_v31  ;;  %v1901_v39 = vmul.f32 %v3174_v34, %v3701_v58  ;;  %v1327_v58 = vld [vmem:[#allocation2 + $0x18] sm:$0xf] }
 0xadd   :  { %3018 = vmatpush3.bf16.msra.mxu0 %v2208_v36  ;;  %3019 = vmatprep.mubr.msk.bf16.mxu0 %vm3236_vm0, %v3235_v0  ;;  %v1903_v42 = vmul.f32 %v3176_v35, %v3705_v60  ;;  %v2400_v59 = vsel %vm668_vm3, %v1327_v58, 0 }
 0xade   :  { %v1911_v41 = vpack.c.bf16 %v1901_v39, %v1901_v39  ;;  %3029 = vmatprep.subr.bf16.mxu0 %v3235_v0 }
 0xadf   :  { %v3178_v43 = vpop.eup %3177  ;;  %v1912_v45 = vpack.c.bf16 %v1903_v42, %v1903_v42 }
 0xae0   :  { %3014 = vmatmul.mubr.msk.bf16.vlgmr.msra.gmra.mxu1 %vm177_vm2, %v1911_v41  ;;  %v1905_v46 = vmul.f32 %v3178_v43, %v3711_v63 }
 0xae1   :  { %3024 = vmatpush3.bf16.msra.mxu1 %v2256_v44  ;;  %3025 = vmatprep.mubr.msk.bf16.mxu1 %vm3236_vm0, %v3235_v0 }
 0xae2   :  { %3035 = vmatprep.subr.bf16.mxu1 %v3235_v0  ;;  %v1913_v48 = vpack.c.bf16 %v1905_v46, %v1905_v46 }
 0xae4   :  { %3020 = vmatmul.mubr.msk.bf16.vlgmr.msra.gmra.mxu0 %vm177_vm2, %v1912_v45 }
 0xae5   :  { %3030 = vmatpush3.bf16.msra.mxu0 %v2306_v47  ;;  %3031 = vmatprep.mubr.msk.bf16.mxu0 %vm3236_vm0, %v3235_v0 }
 0xae6   :  { %3041 = vmatprep.subr.bf16.mxu0 %v3235_v0 }
 0xae8   :  { %3026 = vmatmul.mubr.msk.bf16.vlgmr.msra.gmra.mxu1 %vm177_vm2, %v1913_v48 }
 0xae9   :  { %3037 = vmatprep.mubr.msk.bf16.mxu1 %vm3236_vm0, %v3235_v0  ;;  %3036 = vmatpush3.bf16.msra.mxu1 %v2353_v24 }
 0xaea   :  { %3047 = vmatprep.subr.bf16.mxu1 %v3235_v0 }
 0xb0f   :  { %v2004_v25 = vpop.f32.mrf.mxu1 }
 0xb11   :  { %v2991_v50 = vpop.f32.mrf.mxu1 }
 0xb13   :  { %v1956_v51 = vpop.f32.mrf.mxu0  ;;  %v2007_v52 = vpop.f32.mrf.mxu1 }
 0xb14   :  { %v2298_v53 = vpack.c.bf16 %v2004_v25, %v1956_v51  ;;  %v2701_v25 = vld [vmem:[%s3818_s5 + $0x1] ss:$0 sm:$0xff] }
 0xb15   :  { %v2985_v56 = vpop.f32.mrf.mxu0  ;;  %v2992_v17 = vpop.f32.mrf.mxu1 }
 0xb16   :  { %3032 = vmatmul.mubr.msk.bf16.vlgmr.msra.gmra.mxu0 %vm177_vm2, %v2298_v53 }
 0xb17   :  { %v1959_v57 = vpop.f32.mrf.mxu0  ;;  %3043 = vmatprep.mubr.msk.bf16.mxu0 %vm3236_vm0, %v3235_v0  ;;  %3042 = vmatpush3.bf16.msra.mxu0 %v2400_v59 }
 0xb18   :  { %3053 = vmatprep.subr.bf16.mxu0 %v3235_v0 }
 0xb19   :  { %v2986_v32 = vpop.f32.mrf.mxu0 }
 0xb67   :  { %v2052_v60 = vpop.f32.mrf.mxu0 }
 0xb69   :  { %v2997_v61 = vpop.f32.mrf.mxu0 }
 0xb6b   :  { %v2055_v33 = vpop.f32.mrf.mxu0  ;;  %v2100_v63 = vpop.f32.mrf.mxu1 }
 0xb6c   :  { %v2299_v1 = vpack.c.bf16 %v2100_v63, %v2052_v60 }
 0xb6d   :  { %v2998_v4 = vpop.f32.mrf.mxu0  ;;  %v3003_v5 = vpop.f32.mrf.mxu1 }
 0xb6e   :  { %3038 = vmatmul.mubr.msk.bf16.vlgmr.msra.gmra.mxu1 %vm177_vm2, %v2299_v1 }
 0xb6f   :  { %v2103_v6 = vpop.f32.mrf.mxu1  ;;  %3048 = vmatpush3.bf16.msra.mxu1 %v2447_v3  ;;  %3049 = vmatprep.mubr.msk.bf16.mxu1 %vm3236_vm0, %v3235_v0 }
 0xb71   :  { %v3004_v9 = vpop.f32.mrf.mxu1 }
 0xb9c   :  { %v2148_v10 = vpop.f32.mrf.mxu0 }
 0xb9e   :  { %v3009_v13 = vpop.f32.mrf.mxu0 }
 0xba0   :  { %v2151_v15 = vpop.f32.mrf.mxu0  ;;  %v2196_v16 = vpop.f32.mrf.mxu1 }
 0xba1   :  { %v2300_v14 = vpack.c.bf16 %v2196_v16, %v2148_v10  ;;  %v3105_v16 = vld [vmem:[#allocation4 + $0x8] sm:$0xff]  }
 0xba2   :  { %v3010_v37 = vpop.f32.mrf.mxu0  ;;  %v3015_v18 = vpop.f32.mrf.mxu1 }
 0xba3   :  { %3044 = vmatmul.mubr.msk.bf16.vlgmr.msra.gmra.mxu0 %vm177_vm2, %v2300_v14 }
 0xba4   :  { %v2199_v19 = vpop.f32.mrf.mxu1  ;;  %v2244_v22 = vpop.f32.mrf.mxu0  ;;  %3057 = vmatprep.mubr.msk.bf16.mxu0 %vm3236_vm0, %v3235_v0  ;;  %3054 = vmatpush3.bf16.msra.mxu0 %v3105_v16 }
 0xba5   :  { %3055 = vmatprep.subr.bf16.mxu0 %v3235_v0 }
 0xba6   :  { %v3016_v23 = vpop.f32.mrf.mxu1  ;;  %v3021_v26 = vpop.f32.mrf.mxu0 }
 0xba8   :  { %v2247_v21 = vpop.f32.mrf.mxu0  ;;  %v2292_v7 = vpop.f32.mrf.mxu1 }
 0xba9   :  { %v2301_v20 = vpack.c.bf16 %v2292_v7, %v2244_v22  ;;  %v2702_v21 = vld [vmem:[%s3819_s6 + $0x1] ss:$0 sm:$0xff] }
 0xbaa   :  { %v3022_v27 = vpop.f32.mrf.mxu0  ;;  %v3027_v8 = vpop.f32.mrf.mxu1 }
 0xbab   :  { %3050 = vmatmul.mubr.msk.bf16.vlgmr.msra.gmra.mxu1 %vm177_vm2, %v2301_v20  ;;  %v2703_v20 = vld [vmem:[%s3820_s7 + $0x1] ss:$0 sm:$0xff] }
 0xbac   :  { %v2295_v28 = vpop.f32.mrf.mxu1 }
 0xbae   :  { %v3028_v29 = vpop.f32.mrf.mxu1 }
 0xbd6   :  { %v2342_v30 = vpop.f32.mrf.mxu0 }
 0xbd7   :  { %v2490_v43 = vsel %vm101_vm1, %v2342_v30, 0.0 }
 0xbd8   :  { %v3033_v11 = vpop.f32.mrf.mxu0 }
 0xbda   :  { %v2345_v12 = vpop.f32.mrf.mxu0 }
 0xbdb   :  { %v2497_v49 = vsel %vm101_vm1, %v2345_v12, 0.0 }
 0xbdc   :  { %v3034_v2 = vpop.f32.mrf.mxu0 }
 0xc2e   :  { %v2389_v31 = vpop.f32.mrf.mxu1 }
 0xc2f   :  { %v2491_v41 = vsel %vm101_vm1, %v2389_v31, 0.0 }
 0xc30   :  { %v3039_v34 = vpop.f32.mrf.mxu1  ;;  %v2492_v44 = vadd.f32 %v2491_v41, %v2490_v43  ;;  %v2704_v43 = vld [vmem:[%s3822_s9] ss:$0 sm:$0xff] }
 0xc32   :  { %v2392_v35 = vpop.f32.mrf.mxu1 }
 0xc33   :  { %v2498_v46 = vsel %vm101_vm1, %v2392_v35, 0.0 }
 0xc34   :  { %v3040_v36 = vpop.f32.mrf.mxu1  ;;  %v2499_v51 = vadd.f32 %v2498_v46, %v2497_v49 }
 0xc63   :  { %v2436_v39 = vpop.f32.mrf.mxu0 }
 0xc64   :  { %v2493_v38 = vsel %vm101_vm1, %v2436_v39, 0.0 }
 0xc65   :  { %v3045_v40 = vpop.f32.mrf.mxu0  ;;  %v2494_v47 = vadd.f32 %v2493_v38, %v2492_v44 }
 0xc67   :  { %v2439_v42 = vpop.f32.mrf.mxu0 }
 0xc68   :  { %v2500_v24 = vsel %vm101_vm1, %v2439_v42, 0.0 }
 0xc69   :  { %v3046_v45 = vpop.f32.mrf.mxu0  ;;  %v2501_v56 = vadd.f32 %v2500_v24, %v2499_v51 }
 0xc6b   :  { %v2483_v48 = vpop.f32.mrf.mxu1 }
 0xc6c   :  { %v2495_v50 = vsel %vm101_vm1, %v2483_v48, 0.0 }
 0xc6d   :  { %v2496_v52 = vadd.f32 %v2495_v50, %v2494_v47  ;;  %v3051_v53 = vpop.f32.mrf.mxu1 }
 0xc6f   :  { %v2510_v17 = vadd.f32 %v2701_v25, %v2496_v52  ;;  %v2486_v57 = vpop.f32.mrf.mxu1 }
 0xc70   :  { %v2502_v32 = vsel %vm101_vm1, %v2486_v57, 0.0 }
 0xc71   :  { %v2503_v58 = vadd.f32 %v2502_v32, %v2501_v56  ;;  %v3052_v59 = vpop.f32.mrf.mxu1  ;;  %v2512_v60 = vadd.f32 %v2510_v17, %v3564_v54 }
 0xc73   :  { %v2511_v61 = vadd.f32 %v2701_v25, %v2503_v58  ;;  %v2514_v62 = vsel %vm101_vm1, %v2512_v60, 0.0 }
 0xc74   :  { %2515 = vadd.xlane.f32.xlu0 %v2514_v62 }
 0xc75   :  { %v2513_v33 = vadd.f32 %v2511_v61, %v3566_v55  ;;  %v3106_v55 = vld [vmem:[#allocation4] sm:$0xff]  }
 0xc76   :  { %3056 = vmatpush3.bf16.msra.mxu0 %v3106_v55 }
 0xc77   :  { %v2517_v63 = vsel %vm101_vm1, %v2513_v33, 0.0 }
 0xc78   :  { %2518 = vadd.xlane.f32.xlu1 %v2517_v63 }
 0xcfd   :  { %v2516_v1 = vpop.xlane.xlu0 %2515 }
 0xcfe   :  { %v2520_v3 = vmul.f32 0.03125, %v2516_v1 }
 0xd00   :  { %v2522_v4 = vsub.f32 %v2512_v60, %v2520_v3 }
 0xd01   :  { %v2519_v5 = vpop.xlane.xlu1 %2518 }
 0xd02   :  { %v2521_v6 = vmul.f32 0.03125, %v2519_v5  ;;  %v2524_v9 = vmul.f32 %v2522_v4, %v2522_v4 }
 0xd04   :  { %v2523_v10 = vsub.f32 %v2513_v33, %v2521_v6  ;;  %v2526_v13 = vsel %vm101_vm1, %v2524_v9, 0.0 }
 0xd05   :  { %2527 = vadd.xlane.f32.xlu0 %v2526_v13 }
 0xd06   :  { %v2525_v54 = vmul.f32 %v2523_v10, %v2523_v10 }
 0xd08   :  { %v2529_v15 = vsel %vm101_vm1, %v2525_v54, 0.0 }
 0xd09   :  { %2530 = vadd.xlane.f32.xlu0 %v2529_v15 }
 0xd8e   :  { %v2528_v14 = vpop.xlane.xlu0 %2527 }
 0xd8f   :  { %v2532_v37 = vmul.f32 0.03125, %v2528_v14 }
 0xd91   :  { %v2534_v18 = vadd.f32 1e-05, %v2532_v37 }
 0xd92   :  { %v2531_v19 = vpop.xlane.xlu0 %2530 }
 0xd93   :  { %3179 = vrsqrt.f32 %v2534_v18  ;;  %v2533_v22 = vmul.f32 0.03125, %v2531_v19 }
 0xd95   :  { %v2535_v23 = vadd.f32 1e-05, %v2533_v22 }
 0xd97   :  { %3181 = vrsqrt.f32 %v2535_v23 }
 0xda0   :  { %v3180_v26 = vpop.eup %3179 }
 0xda1   :  { %v2538_v7 = vmul.f32 %v3180_v26, %v2522_v4 }
 0xda3   :  { %v2546_v0 = vmul.f32 %v2702_v21, %v2538_v7 }
 0xda4   :  { %v3182_v27 = vpop.eup %3181 }
 0xda5   :  { %v2539_v8 = vmul.f32 %v3182_v27, %v2523_v10  ;;  %v2554_v28 = vadd.f32 %v2703_v20, %v2546_v0 }
 0xda7   :  { %v2547_v29 = vmul.f32 %v2702_v21, %v2539_v8  ;;  %v2558_v30 = vmul.f32 0.70710677, %v2554_v28  ;;  %v2556_v35 = vmul.f32 0.5, %v2554_v28 }
 0xda9   :  { %v2555_v11 = vadd.f32 %v2703_v20, %v2547_v29  ;;  %3183 = verf.f32 %v2558_v30 }
 0xdab   :  { %v2559_v12 = vmul.f32 0.70710677, %v2555_v11  ;;  %v2557_v36 = vmul.f32 0.5, %v2555_v11 }
 0xdad   :  { %3185 = verf.f32 %v2559_v12 }
 0xdb6   :  { %v3184_v2 = vpop.eup %3183 }
 0xdb7   :  { %v2562_v31 = vadd.f32 1.0, %v3184_v2 }
 0xdb9   :  { %v2564_v40 = vmul.f32 %v2562_v31, %v2556_v35 }
 0xdba   :  { %v3186_v34 = vpop.eup %3185 }
 0xdbb   :  { %v2563_v39 = vadd.f32 1.0, %v3186_v34 }
 0xdbd   :  { %v2565_v41 = vmul.f32 %v2563_v39, %v2557_v36 }
 0xdbf   :  { %v2566_v42 = vpack.c.bf16 %v2565_v41, %v2564_v40 }
 0xdc1   :  { %3058 = vmatmul.mubr.msk.bf16.vlgmr.msra.gmra.mxu0 %vm101_vm1, %v2566_v42 }
 0xe81   :  { %v2627_v38 = vpop.f32.mrf.mxu0 }
 0xe82   :  { %v2628_v44 = vadd.f32 %v2704_v43, %v2627_v38 }
 0xe83   :  { %v3059_v45 = vpop.f32.mrf.mxu0 }
 0xe84   :  { %2634 = vst [vmem:[%s3823_s10] sm:$0xff] %v2628_v44 }
 0xe85   :  { %v2630_v46 = vpop.f32.mrf.mxu0 }
 0xe86   :  { %v2631_v47 = vadd.f32 %v2704_v43, %v2630_v46 }
 0xe87   :  { %v3060_v48 = vpop.f32.mrf.mxu0 }
 0xe88   :  { %2635 = vst [vmem:[%s3823_s10 + $0x8] sm:$0xff] %v2631_v47 }
 0xe89   :  { %2640 = vsyncpa [#allocation3], 1 }
 0xe8a   :  { %2641 = vsyncpa [#allocation5], 1 }

</bundles_post_ra>
